<compile_context>
chip_gen: v7x
topology: tpu7x:2x2x1
jax: 0.10.0
libtpu: 0.0.40
codegen_flags: <defaults>
</compile_context>

<pallas_src>
import jax
import jax.numpy as jnp
from jax.experimental import pallas as pl
from jax.experimental.pallas import tpu as pltpu


_VMEM_SPEC = pl.BlockSpec(memory_space=pltpu.MemorySpace.VMEM)


def _round_up(x, m):
    return ((x + m - 1) // m) * m


# ----------------------------------------------------------------------------
# Fused Pallas kernel (all layers + head in one call, wavefront over (l, t))
# ----------------------------------------------------------------------------
def _make_fused_kernel(num_layers, T, H):
    """Builds the fused kernel for a fixed layer count / sequence length.

    Ref order (inputs, then output):
      x_ref:   (T*Bp, Fp)   time-major, batch-flattened input (f32)
      wih0:    (Fp, 4H)     layer-0 input weights, gates [i|f|o|2g] (f32)
      whh0:    (H, 4H)      layer-0 recurrent weights (bf16)
      b0:      (1, 4H)      layer-0 combined bias (f32)
      per upper layer l>=1:
        wcomb: (2H, 4H)     [W_hh; W_ih] stacked (bf16)
        b:     (1, 4H)      combined bias (f32)
      h0_ref:  (L, Bp, H)
      c0_ref:  (L, Bp, H)
      wlin:    (H, Np)      Linear weight^T, lane-padded (f32)
      blin:    (1, Np)
      out_ref: (Bp, Np)     head output (only HBM writeback)
    """

    def kernel(*refs):
        idx = 0
        x_ref = refs[idx]; idx += 1
        wih0_ref = refs[idx]; whh0_ref = refs[idx + 1]; b0_ref = refs[idx + 2]
        idx += 3
        up_refs = []
        for _ in range(num_layers - 1):
            up_refs.append((refs[idx], refs[idx + 1]))
            idx += 2
        h0_ref, c0_ref, wlin_ref, blin_ref, out_ref = refs[idx:idx + 5]

        Bp = h0_ref.shape[1]

        # Hoisted layer-0 input-to-hidden projection: one small batched MXU
        # matmul for the whole sequence, off the serial critical path (kept
        # f32 for precision; size is trivial).
        gx0 = jnp.dot(x_ref[...], wih0_ref[...],
                      preferred_element_type=jnp.float32) + b0_ref[...]

        whh0 = whh0_ref[...]                    # bf16 (H, 4H)
        wcomb = [r[0][...] for r in up_refs]    # bf16 (2H, 4H)
        bup = [r[1][...] for r in up_refs]      # f32  (1, 4H)

        h = [h0_ref[l] for l in range(num_layers)]
        c = [c0_ref[l] for l in range(num_layers)]
        y = [None] * num_layers  # y[l]: latest-timestep output of layer l

        def cell(gates, c_prev):
            # One full-vreg sigmoid; the g gate was pre-scaled by 2 at prep
            # time so tanh(x) = 2*sigmoid(2x) - 1 is a cheap VPU fixup.
            sig = jax.nn.sigmoid(gates)
            i_g = sig[:, 0:H]
            f_g = sig[:, H:2 * H]
            o_g = sig[:, 2 * H:3 * H]
            g_g = 2.0 * sig[:, 3 * H:4 * H] - 1.0
            c_new = f_g * c_prev + i_g * g_g
            h_new = o_g * jnp.tanh(c_new)
            return h_new, c_new

        # Wavefront: all cells on diagonal d = t + l are independent.  Layers
        # are visited high -> low within a diagonal so y[l-1] (previous
        # diagonal's value) is consumed before layer l-1 overwrites it.
        for d in range(T + num_layers - 1):
            for l in range(num_layers - 1, -1, -1):
                t = d - l
                if t < 0 or t >= T:
                    continue
                if l == 0:
                    gates = gx0[t * Bp:(t + 1) * Bp, :] + jnp.dot(
                        h[0].astype(jnp.bfloat16), whh0,
                        preferred_element_type=jnp.float32)
                else:
                    lhs = jnp.concatenate([h[l], y[l - 1]], axis=1)
                    gates = jnp.dot(lhs.astype(jnp.bfloat16), wcomb[l - 1],
                                    preferred_element_type=jnp.float32)
                    gates = gates + bup[l - 1]
                h[l], c[l] = cell(gates, c[l])
                if l < num_layers - 1:
                    y[l] = h[l]

        # Tanh activation on the last-layer / last-timestep hidden state, then
        # the Linear head.  Output is lane-dense (Bp, 128).
        h_act = jnp.tanh(h[num_layers - 1])
        out_ref[...] = (
            jnp.dot(h_act, wlin_ref[...], preferred_element_type=jnp.float32)
            + blin_ref[...]
        )

    return kernel


# ----------------------------------------------------------------------------
# Wrapper
# ----------------------------------------------------------------------------
def lstm_forward(x, params, h0, c0):
    """Pallas forward pass matching LSTM.forward semantics.

    x:  (B, T, F) float32
    h0, c0: (num_layers, B, H) float32
    returns: (B, 3) float32
    """
    B, T, F = x.shape
    H = params["hidden_size"]
    L = params["num_layers"]
    Bp = max(8, _round_up(B, 8))
    Fp = params["wih0"].shape[0]
    Np = params["wlin"].shape[1]

    # (B, T, F) -> time-major, batch-flattened (T*Bp, Fp), zero-padded.
    x_t = jnp.transpose(x, (1, 0, 2))
    x_t = jnp.pad(x_t, ((0, 0), (0, Bp - B), (0, Fp - F)))
    x_flat = x_t.reshape(T * Bp, Fp)
    h0p = jnp.pad(h0, ((0, 0), (0, Bp - B), (0, 0)))
    c0p = jnp.pad(c0, ((0, 0), (0, Bp - B), (0, 0)))

    args = [x_flat, params["wih0"], params["whh0"], params["b0"]]
    for wcomb, b in params["upper"]:
        args.extend([wcomb, b])
    args.extend([h0p, c0p, params["wlin"], params["blin"]])

    out = pl.pallas_call(
        _make_fused_kernel(L, T, H),
        out_shape=jax.ShapeDtypeStruct((Bp, Np), jnp.float32),
        in_specs=[_VMEM_SPEC] * len(args),
        out_specs=_VMEM_SPEC,
    )(*args)

    return out[:B, :3]


# ----------------------------------------------------------------------------
# Deterministic parameter construction (mirrors nn.LSTM / nn.Linear shapes).
# Kernel-ready weights (reordered, 2x-scaled g gate, padded, bf16 recurrent
# operands) are built ONCE here, not per forward call.
# ----------------------------------------------------------------------------
def _reorder_and_scale(w_t, H):
    """Reorder 4H gate columns [i|f|g|o] -> [i|f|o|2g] (g scaled by 2)."""
    return jnp.concatenate(
        [w_t[:, :2 * H], w_t[:, 3 * H:4 * H], 2.0 * w_t[:, 2 * H:3 * H]],
        axis=1)


def init_params(key, feature_size, hidden_size, num_layers, out_dim=3):
    H = hidden_size
    Fp = max(8, _round_up(feature_size, 8))
    Np = 128  # lane-dense output width for the final linear
    k = 1.0 / jnp.sqrt(jnp.float32(H))

    raw_layers = []
    wih0 = whh0 = b0 = None
    upper = []
    for l in range(num_layers):
        in_sz = feature_size if l == 0 else H
        key, k1, k2, k3, k4 = jax.random.split(key, 5)
        w_ih = jax.random.uniform(k1, (4 * H, in_sz), jnp.float32, -k, k)
        w_hh = jax.random.uniform(k2, (4 * H, H), jnp.float32, -k, k)
        b_ih = jax.random.uniform(k3, (4 * H,), jnp.float32, -k, k)
        b_hh = jax.random.uniform(k4, (4 * H,), jnp.float32, -k, k)
        raw_layers.append((w_ih, w_hh, b_ih, b_hh))

        wih_t = _reorder_and_scale(w_ih.T, H)                    # (in_sz, 4H)
        whh_t = _reorder_and_scale(w_hh.T, H)                    # (H, 4H)
        b = _reorder_and_scale((b_ih + b_hh).reshape(1, -1), H)  # (1, 4H)
        if l == 0:
            wih0 = jnp.pad(wih_t, ((0, Fp - in_sz), (0, 0)))     # f32 (hoisted)
            whh0 = whh_t.astype(jnp.bfloat16)
            b0 = b
        else:
            # lhs is [h | y_prev], so stack as [W_hh ; W_ih].
            wcomb = jnp.concatenate([whh_t, wih_t],
                                    axis=0).astype(jnp.bfloat16)  # (2H, 4H)
            upper.append((wcomb, b))

    key, k5, k6 = jax.random.split(key, 3)
    w_lin = jax.random.uniform(k5, (out_dim, H), jnp.float32, -k, k)
    b_lin = jax.random.uniform(k6, (out_dim,), jnp.float32, -k, k)
    wlin = jnp.pad(w_lin.T, ((0, 0), (0, Np - out_dim)))
    blin = jnp.pad(b_lin, ((0, Np - out_dim),)).reshape(1, Np)

    params = {
        "hidden_size": H,
        "num_layers": num_layers,
        "feature_size": feature_size,
        "wih0": wih0, "whh0": whh0, "b0": b0,
        "upper": upper,
        "wlin": wlin, "blin": blin,
    }
    raw = {"layers": raw_layers, "linear": (w_lin, b_lin)}
    return params, raw, key


def reference_forward(x, raw, h0, c0, hidden_size):
    """Pure-JAX reference mirroring the PyTorch forward (for validation)."""
    H = hidden_size
    B, T, _ = x.shape
    inp = x
    for l, (w_ih, w_hh, b_ih, b_hh) in enumerate(raw["layers"]):
        h, c = h0[l], c0[l]
        outs = []
        for t in range(T):
            g = inp[:, t, :] @ w_ih.T + b_ih + h @ w_hh.T + b_hh
            i_g = jax.nn.sigmoid(g[:, 0 * H:1 * H])
            f_g = jax.nn.sigmoid(g[:, 1 * H:2 * H])
            g_g = jnp.tanh(g[:, 2 * H:3 * H])
            o_g = jax.nn.sigmoid(g[:, 3 * H:4 * H])
            c = f_g * c + i_g * g_g
            h = o_g * jnp.tanh(c)
            outs.append(h)
        inp = jnp.stack(outs, axis=1)
    y = jnp.tanh(inp[:, -1, :])
    w_lin, b_lin = raw["linear"]
    return y @ w_lin.T + b_lin


# ----------------------------------------------------------------------------
if __name__ == "__main__":
    B, T = 2, 8
    feature_size, hidden_size, num_layers = 4, 32, 2

    key = jax.random.PRNGKey(0)
    params, raw, key = init_params(key, feature_size, hidden_size, num_layers)

    key, kx, kh, kc = jax.random.split(key, 4)
    x = jax.random.normal(kx, (B, T, feature_size), jnp.float32)
    # _init_hidden_states uses torch.rand -> uniform [0, 1)
    h0 = jax.random.uniform(kh, (num_layers, B, hidden_size), jnp.float32)
    c0 = jax.random.uniform(kc, (num_layers, B, hidden_size), jnp.float32)

    out = lstm_forward(x, params, h0, c0)
    out = jax.block_until_ready(out)

    ref = reference_forward(x, raw, h0, c0, hidden_size)
    assert out.shape == (B, 3), out.shape
    assert jnp.allclose(out, ref, rtol=1e-2, atol=1e-2), (out, ref)

    print("KERNEL_OK")
</pallas_src>

<mosaic_0001>
module attributes {stable_mosaic.version = 11 : i64} {
  func.func @kernel(%arg0: memref<64x8xf32, #tpu.memory_space<vmem>>, %arg1: memref<8x128xf32, #tpu.memory_space<vmem>>, %arg2: memref<32x128xbf16, #tpu.memory_space<vmem>>, %arg3: memref<1x128xf32, #tpu.memory_space<vmem>>, %arg4: memref<64x128xbf16, #tpu.memory_space<vmem>>, %arg5: memref<1x128xf32, #tpu.memory_space<vmem>>, %arg6: memref<2x8x32xf32, #tpu.memory_space<vmem>>, %arg7: memref<2x8x32xf32, #tpu.memory_space<vmem>>, %arg8: memref<32x128xf32, #tpu.memory_space<vmem>>, %arg9: memref<1x128xf32, #tpu.memory_space<vmem>>, %arg10: memref<8x128xf32, #tpu.memory_space<vmem>>) attributes {dimension_semantics = [], scalar_prefetch = 0 : i64, scratch_operands = 0 : i64, tpu.core_type = #tpu.core_type<tc>} {
    %c0 = arith.constant 0 : index
    %c0_0 = arith.constant 0 : index
    %0 = vector.load %arg0[%c0, %c0_0] : memref<64x8xf32, #tpu.memory_space<vmem>>, vector<64x8xf32>
    %c0_1 = arith.constant 0 : index
    %c0_2 = arith.constant 0 : index
    %1 = vector.load %arg1[%c0_1, %c0_2] : memref<8x128xf32, #tpu.memory_space<vmem>>, vector<8x128xf32>
    %cst = arith.constant dense<0.000000e+00> : vector<64x128xf32>
    %2 = tpu.matmul %0, %1, %cst {dimension_numbers = #tpu.dot_dimension_numbers<[1], [0], [0], [1], [0, 0, 1, 1], [], []>} : vector<64x8xf32>, vector<8x128xf32>, vector<64x128xf32> -> vector<64x128xf32>
    %c0_3 = arith.constant 0 : index
    %c0_4 = arith.constant 0 : index
    %3 = vector.load %arg3[%c0_3, %c0_4] : memref<1x128xf32, #tpu.memory_space<vmem>>, vector<1x128xf32>
    %4 = vector.broadcast %3 : vector<1x128xf32> to vector<64x128xf32>
    %5 = arith.addf %2, %4 : vector<64x128xf32>
    %c0_5 = arith.constant 0 : index
    %c0_6 = arith.constant 0 : index
    %6 = vector.load %arg2[%c0_5, %c0_6] : memref<32x128xbf16, #tpu.memory_space<vmem>>, vector<32x128xbf16>
    %c0_7 = arith.constant 0 : index
    %c0_8 = arith.constant 0 : index
    %7 = vector.load %arg4[%c0_7, %c0_8] : memref<64x128xbf16, #tpu.memory_space<vmem>>, vector<64x128xbf16>
    %c0_9 = arith.constant 0 : index
    %c0_10 = arith.constant 0 : index
    %8 = vector.load %arg5[%c0_9, %c0_10] : memref<1x128xf32, #tpu.memory_space<vmem>>, vector<1x128xf32>
    %c0_11 = arith.constant 0 : index
    %c0_12 = arith.constant 0 : index
    %c0_13 = arith.constant 0 : index
    %9 = vector.load %arg6[%c0_11, %c0_12, %c0_13] : memref<2x8x32xf32, #tpu.memory_space<vmem>>, vector<1x8x32xf32>
    %10 = vector.shape_cast %9 : vector<1x8x32xf32> to vector<8x32xf32>
    %c1 = arith.constant 1 : index
    %c0_14 = arith.constant 0 : index
    %c0_15 = arith.constant 0 : index
    %11 = vector.load %arg6[%c1, %c0_14, %c0_15] : memref<2x8x32xf32, #tpu.memory_space<vmem>>, vector<1x8x32xf32>
    %12 = vector.shape_cast %11 : vector<1x8x32xf32> to vector<8x32xf32>
    %c0_16 = arith.constant 0 : index
    %c0_17 = arith.constant 0 : index
    %c0_18 = arith.constant 0 : index
    %13 = vector.load %arg7[%c0_16, %c0_17, %c0_18] : memref<2x8x32xf32, #tpu.memory_space<vmem>>, vector<1x8x32xf32>
    %14 = vector.shape_cast %13 : vector<1x8x32xf32> to vector<8x32xf32>
    %c1_19 = arith.constant 1 : index
    %c0_20 = arith.constant 0 : index
    %c0_21 = arith.constant 0 : index
    %15 = vector.load %arg7[%c1_19, %c0_20, %c0_21] : memref<2x8x32xf32, #tpu.memory_space<vmem>>, vector<1x8x32xf32>
    %16 = vector.shape_cast %15 : vector<1x8x32xf32> to vector<8x32xf32>
    %17 = vector.extract_strided_slice %5 {offsets = [0, 0], sizes = [8, 128], strides = [1, 1]} : vector<64x128xf32> to vector<8x128xf32>
    %18 = arith.truncf %10 : vector<8x32xf32> to vector<8x32xbf16>
    %cst_22 = arith.constant dense<0.000000e+00> : vector<8x128xf32>
    %19 = tpu.matmul %18, %6, %cst_22 {dimension_numbers = #tpu.dot_dimension_numbers<[1], [0], [0], [1], [0, 0, 1, 1], [], []>} : vector<8x32xbf16>, vector<32x128xbf16>, vector<8x128xf32> -> vector<8x128xf32>
    %20 = arith.addf %17, %19 : vector<8x128xf32>
    %21 = arith.negf %20 : vector<8x128xf32>
    %22 = math.exp %21 : vector<8x128xf32>
    %cst_23 = arith.constant 1.000000e+00 : f32
    %23 = vector.broadcast %cst_23 : f32 to vector<8x128xf32>
    %24 = arith.addf %23, %22 : vector<8x128xf32>
    %25 = arith.divf %23, %24 : vector<8x128xf32>
    %26 = vector.extract_strided_slice %25 {offsets = [0, 0], sizes = [8, 32], strides = [1, 1]} : vector<8x128xf32> to vector<8x32xf32>
    %27 = vector.extract_strided_slice %25 {offsets = [0, 32], sizes = [8, 32], strides = [1, 1]} : vector<8x128xf32> to vector<8x32xf32>
    %28 = vector.extract_strided_slice %25 {offsets = [0, 64], sizes = [8, 32], strides = [1, 1]} : vector<8x128xf32> to vector<8x32xf32>
    %29 = vector.extract_strided_slice %25 {offsets = [0, 96], sizes = [8, 32], strides = [1, 1]} : vector<8x128xf32> to vector<8x32xf32>
    %cst_24 = arith.constant 2.000000e+00 : f32
    %30 = vector.broadcast %cst_24 : f32 to vector<8x32xf32>
    %31 = arith.mulf %30, %29 : vector<8x32xf32>
    %cst_25 = arith.constant 1.000000e+00 : f32
    %32 = vector.broadcast %cst_25 : f32 to vector<8x32xf32>
    %33 = arith.subf %31, %32 : vector<8x32xf32>
    %34 = arith.mulf %27, %14 : vector<8x32xf32>
    %35 = arith.mulf %26, %33 : vector<8x32xf32>
    %36 = arith.addf %34, %35 : vector<8x32xf32>
    %37 = math.tanh %36 : vector<8x32xf32>
    %38 = arith.mulf %28, %37 : vector<8x32xf32>
    %39 = tpu.concatenate %12, %38 in 1 : vector<8x32xf32>, vector<8x32xf32> -> vector<8x64xf32>
    %40 = arith.truncf %39 : vector<8x64xf32> to vector<8x64xbf16>
    %cst_26 = arith.constant dense<0.000000e+00> : vector<8x128xf32>
    %41 = tpu.matmul %40, %7, %cst_26 {dimension_numbers = #tpu.dot_dimension_numbers<[1], [0], [0], [1], [0, 0, 1, 1], [], []>} : vector<8x64xbf16>, vector<64x128xbf16>, vector<8x128xf32> -> vector<8x128xf32>
    %42 = vector.broadcast %8 : vector<1x128xf32> to vector<8x128xf32>
    %43 = arith.addf %41, %42 : vector<8x128xf32>
    %44 = arith.negf %43 : vector<8x128xf32>
    %45 = math.exp %44 : vector<8x128xf32>
    %cst_27 = arith.constant 1.000000e+00 : f32
    %46 = vector.broadcast %cst_27 : f32 to vector<8x128xf32>
    %47 = arith.addf %46, %45 : vector<8x128xf32>
    %48 = arith.divf %46, %47 : vector<8x128xf32>
    %49 = vector.extract_strided_slice %48 {offsets = [0, 0], sizes = [8, 32], strides = [1, 1]} : vector<8x128xf32> to vector<8x32xf32>
    %50 = vector.extract_strided_slice %48 {offsets = [0, 32], sizes = [8, 32], strides = [1, 1]} : vector<8x128xf32> to vector<8x32xf32>
    %51 = vector.extract_strided_slice %48 {offsets = [0, 64], sizes = [8, 32], strides = [1, 1]} : vector<8x128xf32> to vector<8x32xf32>
    %52 = vector.extract_strided_slice %48 {offsets = [0, 96], sizes = [8, 32], strides = [1, 1]} : vector<8x128xf32> to vector<8x32xf32>
    %cst_28 = arith.constant 2.000000e+00 : f32
    %53 = vector.broadcast %cst_28 : f32 to vector<8x32xf32>
    %54 = arith.mulf %53, %52 : vector<8x32xf32>
    %cst_29 = arith.constant 1.000000e+00 : f32
    %55 = vector.broadcast %cst_29 : f32 to vector<8x32xf32>
    %56 = arith.subf %54, %55 : vector<8x32xf32>
    %57 = arith.mulf %50, %16 : vector<8x32xf32>
    %58 = arith.mulf %49, %56 : vector<8x32xf32>
    %59 = arith.addf %57, %58 : vector<8x32xf32>
    %60 = math.tanh %59 : vector<8x32xf32>
    %61 = arith.mulf %51, %60 : vector<8x32xf32>
    %62 = vector.extract_strided_slice %5 {offsets = [8, 0], sizes = [8, 128], strides = [1, 1]} : vector<64x128xf32> to vector<8x128xf32>
    %63 = arith.truncf %38 : vector<8x32xf32> to vector<8x32xbf16>
    %cst_30 = arith.constant dense<0.000000e+00> : vector<8x128xf32>
    %64 = tpu.matmul %63, %6, %cst_30 {dimension_numbers = #tpu.dot_dimension_numbers<[1], [0], [0], [1], [0, 0, 1, 1], [], []>} : vector<8x32xbf16>, vector<32x128xbf16>, vector<8x128xf32> -> vector<8x128xf32>
    %65 = arith.addf %62, %64 : vector<8x128xf32>
    %66 = arith.negf %65 : vector<8x128xf32>
    %67 = math.exp %66 : vector<8x128xf32>
    %cst_31 = arith.constant 1.000000e+00 : f32
    %68 = vector.broadcast %cst_31 : f32 to vector<8x128xf32>
    %69 = arith.addf %68, %67 : vector<8x128xf32>
    %70 = arith.divf %68, %69 : vector<8x128xf32>
    %71 = vector.extract_strided_slice %70 {offsets = [0, 0], sizes = [8, 32], strides = [1, 1]} : vector<8x128xf32> to vector<8x32xf32>
    %72 = vector.extract_strided_slice %70 {offsets = [0, 32], sizes = [8, 32], strides = [1, 1]} : vector<8x128xf32> to vector<8x32xf32>
    %73 = vector.extract_strided_slice %70 {offsets = [0, 64], sizes = [8, 32], strides = [1, 1]} : vector<8x128xf32> to vector<8x32xf32>
    %74 = vector.extract_strided_slice %70 {offsets = [0, 96], sizes = [8, 32], strides = [1, 1]} : vector<8x128xf32> to vector<8x32xf32>
    %cst_32 = arith.constant 2.000000e+00 : f32
    %75 = vector.broadcast %cst_32 : f32 to vector<8x32xf32>
    %76 = arith.mulf %75, %74 : vector<8x32xf32>
    %cst_33 = arith.constant 1.000000e+00 : f32
    %77 = vector.broadcast %cst_33 : f32 to vector<8x32xf32>
    %78 = arith.subf %76, %77 : vector<8x32xf32>
    %79 = arith.mulf %72, %36 : vector<8x32xf32>
    %80 = arith.mulf %71, %78 : vector<8x32xf32>
    %81 = arith.addf %79, %80 : vector<8x32xf32>
    %82 = math.tanh %81 : vector<8x32xf32>
    %83 = arith.mulf %73, %82 : vector<8x32xf32>
    %84 = tpu.concatenate %61, %83 in 1 : vector<8x32xf32>, vector<8x32xf32> -> vector<8x64xf32>
    %85 = arith.truncf %84 : vector<8x64xf32> to vector<8x64xbf16>
    %cst_34 = arith.constant dense<0.000000e+00> : vector<8x128xf32>
    %86 = tpu.matmul %85, %7, %cst_34 {dimension_numbers = #tpu.dot_dimension_numbers<[1], [0], [0], [1], [0, 0, 1, 1], [], []>} : vector<8x64xbf16>, vector<64x128xbf16>, vector<8x128xf32> -> vector<8x128xf32>
    %87 = vector.broadcast %8 : vector<1x128xf32> to vector<8x128xf32>
    %88 = arith.addf %86, %87 : vector<8x128xf32>
    %89 = arith.negf %88 : vector<8x128xf32>
    %90 = math.exp %89 : vector<8x128xf32>
    %cst_35 = arith.constant 1.000000e+00 : f32
    %91 = vector.broadcast %cst_35 : f32 to vector<8x128xf32>
    %92 = arith.addf %91, %90 : vector<8x128xf32>
    %93 = arith.divf %91, %92 : vector<8x128xf32>
    %94 = vector.extract_strided_slice %93 {offsets = [0, 0], sizes = [8, 32], strides = [1, 1]} : vector<8x128xf32> to vector<8x32xf32>
    %95 = vector.extract_strided_slice %93 {offsets = [0, 32], sizes = [8, 32], strides = [1, 1]} : vector<8x128xf32> to vector<8x32xf32>
    %96 = vector.extract_strided_slice %93 {offsets = [0, 64], sizes = [8, 32], strides = [1, 1]} : vector<8x128xf32> to vector<8x32xf32>
    %97 = vector.extract_strided_slice %93 {offsets = [0, 96], sizes = [8, 32], strides = [1, 1]} : vector<8x128xf32> to vector<8x32xf32>
    %cst_36 = arith.constant 2.000000e+00 : f32
    %98 = vector.broadcast %cst_36 : f32 to vector<8x32xf32>
    %99 = arith.mulf %98, %97 : vector<8x32xf32>
    %cst_37 = arith.constant 1.000000e+00 : f32
    %100 = vector.broadcast %cst_37 : f32 to vector<8x32xf32>
    %101 = arith.subf %99, %100 : vector<8x32xf32>
    %102 = arith.mulf %95, %59 : vector<8x32xf32>
    %103 = arith.mulf %94, %101 : vector<8x32xf32>
    %104 = arith.addf %102, %103 : vector<8x32xf32>
    %105 = math.tanh %104 : vector<8x32xf32>
    %106 = arith.mulf %96, %105 : vector<8x32xf32>
    %107 = vector.extract_strided_slice %5 {offsets = [16, 0], sizes = [8, 128], strides = [1, 1]} : vector<64x128xf32> to vector<8x128xf32>
    %108 = arith.truncf %83 : vector<8x32xf32> to vector<8x32xbf16>
    %cst_38 = arith.constant dense<0.000000e+00> : vector<8x128xf32>
    %109 = tpu.matmul %108, %6, %cst_38 {dimension_numbers = #tpu.dot_dimension_numbers<[1], [0], [0], [1], [0, 0, 1, 1], [], []>} : vector<8x32xbf16>, vector<32x128xbf16>, vector<8x128xf32> -> vector<8x128xf32>
    %110 = arith.addf %107, %109 : vector<8x128xf32>
    %111 = arith.negf %110 : vector<8x128xf32>
    %112 = math.exp %111 : vector<8x128xf32>
    %cst_39 = arith.constant 1.000000e+00 : f32
    %113 = vector.broadcast %cst_39 : f32 to vector<8x128xf32>
    %114 = arith.addf %113, %112 : vector<8x128xf32>
    %115 = arith.divf %113, %114 : vector<8x128xf32>
    %116 = vector.extract_strided_slice %115 {offsets = [0, 0], sizes = [8, 32], strides = [1, 1]} : vector<8x128xf32> to vector<8x32xf32>
    %117 = vector.extract_strided_slice %115 {offsets = [0, 32], sizes = [8, 32], strides = [1, 1]} : vector<8x128xf32> to vector<8x32xf32>
    %118 = vector.extract_strided_slice %115 {offsets = [0, 64], sizes = [8, 32], strides = [1, 1]} : vector<8x128xf32> to vector<8x32xf32>
    %119 = vector.extract_strided_slice %115 {offsets = [0, 96], sizes = [8, 32], strides = [1, 1]} : vector<8x128xf32> to vector<8x32xf32>
    %cst_40 = arith.constant 2.000000e+00 : f32
    %120 = vector.broadcast %cst_40 : f32 to vector<8x32xf32>
    %121 = arith.mulf %120, %119 : vector<8x32xf32>
    %cst_41 = arith.constant 1.000000e+00 : f32
    %122 = vector.broadcast %cst_41 : f32 to vector<8x32xf32>
    %123 = arith.subf %121, %122 : vector<8x32xf32>
    %124 = arith.mulf %117, %81 : vector<8x32xf32>
    %125 = arith.mulf %116, %123 : vector<8x32xf32>
    %126 = arith.addf %124, %125 : vector<8x32xf32>
    %127 = math.tanh %126 : vector<8x32xf32>
    %128 = arith.mulf %118, %127 : vector<8x32xf32>
    %129 = tpu.concatenate %106, %128 in 1 : vector<8x32xf32>, vector<8x32xf32> -> vector<8x64xf32>
    %130 = arith.truncf %129 : vector<8x64xf32> to vector<8x64xbf16>
    %cst_42 = arith.constant dense<0.000000e+00> : vector<8x128xf32>
    %131 = tpu.matmul %130, %7, %cst_42 {dimension_numbers = #tpu.dot_dimension_numbers<[1], [0], [0], [1], [0, 0, 1, 1], [], []>} : vector<8x64xbf16>, vector<64x128xbf16>, vector<8x128xf32> -> vector<8x128xf32>
    %132 = vector.broadcast %8 : vector<1x128xf32> to vector<8x128xf32>
    %133 = arith.addf %131, %132 : vector<8x128xf32>
    %134 = arith.negf %133 : vector<8x128xf32>
    %135 = math.exp %134 : vector<8x128xf32>
    %cst_43 = arith.constant 1.000000e+00 : f32
    %136 = vector.broadcast %cst_43 : f32 to vector<8x128xf32>
    %137 = arith.addf %136, %135 : vector<8x128xf32>
    %138 = arith.divf %136, %137 : vector<8x128xf32>
    %139 = vector.extract_strided_slice %138 {offsets = [0, 0], sizes = [8, 32], strides = [1, 1]} : vector<8x128xf32> to vector<8x32xf32>
    %140 = vector.extract_strided_slice %138 {offsets = [0, 32], sizes = [8, 32], strides = [1, 1]} : vector<8x128xf32> to vector<8x32xf32>
    %141 = vector.extract_strided_slice %138 {offsets = [0, 64], sizes = [8, 32], strides = [1, 1]} : vector<8x128xf32> to vector<8x32xf32>
    %142 = vector.extract_strided_slice %138 {offsets = [0, 96], sizes = [8, 32], strides = [1, 1]} : vector<8x128xf32> to vector<8x32xf32>
    %cst_44 = arith.constant 2.000000e+00 : f32
    %143 = vector.broadcast %cst_44 : f32 to vector<8x32xf32>
    %144 = arith.mulf %143, %142 : vector<8x32xf32>
    %cst_45 = arith.constant 1.000000e+00 : f32
    %145 = vector.broadcast %cst_45 : f32 to vector<8x32xf32>
    %146 = arith.subf %144, %145 : vector<8x32xf32>
    %147 = arith.mulf %140, %104 : vector<8x32xf32>
    %148 = arith.mulf %139, %146 : vector<8x32xf32>
    %149 = arith.addf %147, %148 : vector<8x32xf32>
    %150 = math.tanh %149 : vector<8x32xf32>
    %151 = arith.mulf %141, %150 : vector<8x32xf32>
    %152 = vector.extract_strided_slice %5 {offsets = [24, 0], sizes = [8, 128], strides = [1, 1]} : vector<64x128xf32> to vector<8x128xf32>
    %153 = arith.truncf %128 : vector<8x32xf32> to vector<8x32xbf16>
    %cst_46 = arith.constant dense<0.000000e+00> : vector<8x128xf32>
    %154 = tpu.matmul %153, %6, %cst_46 {dimension_numbers = #tpu.dot_dimension_numbers<[1], [0], [0], [1], [0, 0, 1, 1], [], []>} : vector<8x32xbf16>, vector<32x128xbf16>, vector<8x128xf32> -> vector<8x128xf32>
    %155 = arith.addf %152, %154 : vector<8x128xf32>
    %156 = arith.negf %155 : vector<8x128xf32>
    %157 = math.exp %156 : vector<8x128xf32>
    %cst_47 = arith.constant 1.000000e+00 : f32
    %158 = vector.broadcast %cst_47 : f32 to vector<8x128xf32>
    %159 = arith.addf %158, %157 : vector<8x128xf32>
    %160 = arith.divf %158, %159 : vector<8x128xf32>
    %161 = vector.extract_strided_slice %160 {offsets = [0, 0], sizes = [8, 32], strides = [1, 1]} : vector<8x128xf32> to vector<8x32xf32>
    %162 = vector.extract_strided_slice %160 {offsets = [0, 32], sizes = [8, 32], strides = [1, 1]} : vector<8x128xf32> to vector<8x32xf32>
    %163 = vector.extract_strided_slice %160 {offsets = [0, 64], sizes = [8, 32], strides = [1, 1]} : vector<8x128xf32> to vector<8x32xf32>
    %164 = vector.extract_strided_slice %160 {offsets = [0, 96], sizes = [8, 32], strides = [1, 1]} : vector<8x128xf32> to vector<8x32xf32>
    %cst_48 = arith.constant 2.000000e+00 : f32
    %165 = vector.broadcast %cst_48 : f32 to vector<8x32xf32>
    %166 = arith.mulf %165, %164 : vector<8x32xf32>
    %cst_49 = arith.constant 1.000000e+00 : f32
    %167 = vector.broadcast %cst_49 : f32 to vector<8x32xf32>
    %168 = arith.subf %166, %167 : vector<8x32xf32>
    %169 = arith.mulf %162, %126 : vector<8x32xf32>
    %170 = arith.mulf %161, %168 : vector<8x32xf32>
    %171 = arith.addf %169, %170 : vector<8x32xf32>
    %172 = math.tanh %171 : vector<8x32xf32>
    %173 = arith.mulf %163, %172 : vector<8x32xf32>
    %174 = tpu.concatenate %151, %173 in 1 : vector<8x32xf32>, vector<8x32xf32> -> vector<8x64xf32>
    %175 = arith.truncf %174 : vector<8x64xf32> to vector<8x64xbf16>
    %cst_50 = arith.constant dense<0.000000e+00> : vector<8x128xf32>
    %176 = tpu.matmul %175, %7, %cst_50 {dimension_numbers = #tpu.dot_dimension_numbers<[1], [0], [0], [1], [0, 0, 1, 1], [], []>} : vector<8x64xbf16>, vector<64x128xbf16>, vector<8x128xf32> -> vector<8x128xf32>
    %177 = vector.broadcast %8 : vector<1x128xf32> to vector<8x128xf32>
    %178 = arith.addf %176, %177 : vector<8x128xf32>
    %179 = arith.negf %178 : vector<8x128xf32>
    %180 = math.exp %179 : vector<8x128xf32>
    %cst_51 = arith.constant 1.000000e+00 : f32
    %181 = vector.broadcast %cst_51 : f32 to vector<8x128xf32>
    %182 = arith.addf %181, %180 : vector<8x128xf32>
    %183 = arith.divf %181, %182 : vector<8x128xf32>
    %184 = vector.extract_strided_slice %183 {offsets = [0, 0], sizes = [8, 32], strides = [1, 1]} : vector<8x128xf32> to vector<8x32xf32>
    %185 = vector.extract_strided_slice %183 {offsets = [0, 32], sizes = [8, 32], strides = [1, 1]} : vector<8x128xf32> to vector<8x32xf32>
    %186 = vector.extract_strided_slice %183 {offsets = [0, 64], sizes = [8, 32], strides = [1, 1]} : vector<8x128xf32> to vector<8x32xf32>
    %187 = vector.extract_strided_slice %183 {offsets = [0, 96], sizes = [8, 32], strides = [1, 1]} : vector<8x128xf32> to vector<8x32xf32>
    %cst_52 = arith.constant 2.000000e+00 : f32
    %188 = vector.broadcast %cst_52 : f32 to vector<8x32xf32>
    %189 = arith.mulf %188, %187 : vector<8x32xf32>
    %cst_53 = arith.constant 1.000000e+00 : f32
    %190 = vector.broadcast %cst_53 : f32 to vector<8x32xf32>
    %191 = arith.subf %189, %190 : vector<8x32xf32>
    %192 = arith.mulf %185, %149 : vector<8x32xf32>
    %193 = arith.mulf %184, %191 : vector<8x32xf32>
    %194 = arith.addf %192, %193 : vector<8x32xf32>
    %195 = math.tanh %194 : vector<8x32xf32>
    %196 = arith.mulf %186, %195 : vector<8x32xf32>
    %197 = vector.extract_strided_slice %5 {offsets = [32, 0], sizes = [8, 128], strides = [1, 1]} : vector<64x128xf32> to vector<8x128xf32>
    %198 = arith.truncf %173 : vector<8x32xf32> to vector<8x32xbf16>
    %cst_54 = arith.constant dense<0.000000e+00> : vector<8x128xf32>
    %199 = tpu.matmul %198, %6, %cst_54 {dimension_numbers = #tpu.dot_dimension_numbers<[1], [0], [0], [1], [0, 0, 1, 1], [], []>} : vector<8x32xbf16>, vector<32x128xbf16>, vector<8x128xf32> -> vector<8x128xf32>
    %200 = arith.addf %197, %199 : vector<8x128xf32>
    %201 = arith.negf %200 : vector<8x128xf32>
    %202 = math.exp %201 : vector<8x128xf32>
    %cst_55 = arith.constant 1.000000e+00 : f32
    %203 = vector.broadcast %cst_55 : f32 to vector<8x128xf32>
    %204 = arith.addf %203, %202 : vector<8x128xf32>
    %205 = arith.divf %203, %204 : vector<8x128xf32>
    %206 = vector.extract_strided_slice %205 {offsets = [0, 0], sizes = [8, 32], strides = [1, 1]} : vector<8x128xf32> to vector<8x32xf32>
    %207 = vector.extract_strided_slice %205 {offsets = [0, 32], sizes = [8, 32], strides = [1, 1]} : vector<8x128xf32> to vector<8x32xf32>
    %208 = vector.extract_strided_slice %205 {offsets = [0, 64], sizes = [8, 32], strides = [1, 1]} : vector<8x128xf32> to vector<8x32xf32>
    %209 = vector.extract_strided_slice %205 {offsets = [0, 96], sizes = [8, 32], strides = [1, 1]} : vector<8x128xf32> to vector<8x32xf32>
    %cst_56 = arith.constant 2.000000e+00 : f32
    %210 = vector.broadcast %cst_56 : f32 to vector<8x32xf32>
    %211 = arith.mulf %210, %209 : vector<8x32xf32>
    %cst_57 = arith.constant 1.000000e+00 : f32
    %212 = vector.broadcast %cst_57 : f32 to vector<8x32xf32>
    %213 = arith.subf %211, %212 : vector<8x32xf32>
    %214 = arith.mulf %207, %171 : vector<8x32xf32>
    %215 = arith.mulf %206, %213 : vector<8x32xf32>
    %216 = arith.addf %214, %215 : vector<8x32xf32>
    %217 = math.tanh %216 : vector<8x32xf32>
    %218 = arith.mulf %208, %217 : vector<8x32xf32>
    %219 = tpu.concatenate %196, %218 in 1 : vector<8x32xf32>, vector<8x32xf32> -> vector<8x64xf32>
    %220 = arith.truncf %219 : vector<8x64xf32> to vector<8x64xbf16>
    %cst_58 = arith.constant dense<0.000000e+00> : vector<8x128xf32>
    %221 = tpu.matmul %220, %7, %cst_58 {dimension_numbers = #tpu.dot_dimension_numbers<[1], [0], [0], [1], [0, 0, 1, 1], [], []>} : vector<8x64xbf16>, vector<64x128xbf16>, vector<8x128xf32> -> vector<8x128xf32>
    %222 = vector.broadcast %8 : vector<1x128xf32> to vector<8x128xf32>
    %223 = arith.addf %221, %222 : vector<8x128xf32>
    %224 = arith.negf %223 : vector<8x128xf32>
    %225 = math.exp %224 : vector<8x128xf32>
    %cst_59 = arith.constant 1.000000e+00 : f32
    %226 = vector.broadcast %cst_59 : f32 to vector<8x128xf32>
    %227 = arith.addf %226, %225 : vector<8x128xf32>
    %228 = arith.divf %226, %227 : vector<8x128xf32>
    %229 = vector.extract_strided_slice %228 {offsets = [0, 0], sizes = [8, 32], strides = [1, 1]} : vector<8x128xf32> to vector<8x32xf32>
    %230 = vector.extract_strided_slice %228 {offsets = [0, 32], sizes = [8, 32], strides = [1, 1]} : vector<8x128xf32> to vector<8x32xf32>
    %231 = vector.extract_strided_slice %228 {offsets = [0, 64], sizes = [8, 32], strides = [1, 1]} : vector<8x128xf32> to vector<8x32xf32>
    %232 = vector.extract_strided_slice %228 {offsets = [0, 96], sizes = [8, 32], strides = [1, 1]} : vector<8x128xf32> to vector<8x32xf32>
    %cst_60 = arith.constant 2.000000e+00 : f32
    %233 = vector.broadcast %cst_60 : f32 to vector<8x32xf32>
    %234 = arith.mulf %233, %232 : vector<8x32xf32>
    %cst_61 = arith.constant 1.000000e+00 : f32
    %235 = vector.broadcast %cst_61 : f32 to vector<8x32xf32>
    %236 = arith.subf %234, %235 : vector<8x32xf32>
    %237 = arith.mulf %230, %194 : vector<8x32xf32>
    %238 = arith.mulf %229, %236 : vector<8x32xf32>
    %239 = arith.addf %237, %238 : vector<8x32xf32>
    %240 = math.tanh %239 : vector<8x32xf32>
    %241 = arith.mulf %231, %240 : vector<8x32xf32>
    %242 = vector.extract_strided_slice %5 {offsets = [40, 0], sizes = [8, 128], strides = [1, 1]} : vector<64x128xf32> to vector<8x128xf32>
    %243 = arith.truncf %218 : vector<8x32xf32> to vector<8x32xbf16>
    %cst_62 = arith.constant dense<0.000000e+00> : vector<8x128xf32>
    %244 = tpu.matmul %243, %6, %cst_62 {dimension_numbers = #tpu.dot_dimension_numbers<[1], [0], [0], [1], [0, 0, 1, 1], [], []>} : vector<8x32xbf16>, vector<32x128xbf16>, vector<8x128xf32> -> vector<8x128xf32>
    %245 = arith.addf %242, %244 : vector<8x128xf32>
    %246 = arith.negf %245 : vector<8x128xf32>
    %247 = math.exp %246 : vector<8x128xf32>
    %cst_63 = arith.constant 1.000000e+00 : f32
    %248 = vector.broadcast %cst_63 : f32 to vector<8x128xf32>
    %249 = arith.addf %248, %247 : vector<8x128xf32>
    %250 = arith.divf %248, %249 : vector<8x128xf32>
    %251 = vector.extract_strided_slice %250 {offsets = [0, 0], sizes = [8, 32], strides = [1, 1]} : vector<8x128xf32> to vector<8x32xf32>
    %252 = vector.extract_strided_slice %250 {offsets = [0, 32], sizes = [8, 32], strides = [1, 1]} : vector<8x128xf32> to vector<8x32xf32>
    %253 = vector.extract_strided_slice %250 {offsets = [0, 64], sizes = [8, 32], strides = [1, 1]} : vector<8x128xf32> to vector<8x32xf32>
    %254 = vector.extract_strided_slice %250 {offsets = [0, 96], sizes = [8, 32], strides = [1, 1]} : vector<8x128xf32> to vector<8x32xf32>
    %cst_64 = arith.constant 2.000000e+00 : f32
    %255 = vector.broadcast %cst_64 : f32 to vector<8x32xf32>
    %256 = arith.mulf %255, %254 : vector<8x32xf32>
    %cst_65 = arith.constant 1.000000e+00 : f32
    %257 = vector.broadcast %cst_65 : f32 to vector<8x32xf32>
    %258 = arith.subf %256, %257 : vector<8x32xf32>
    %259 = arith.mulf %252, %216 : vector<8x32xf32>
    %260 = arith.mulf %251, %258 : vector<8x32xf32>
    %261 = arith.addf %259, %260 : vector<8x32xf32>
    %262 = math.tanh %261 : vector<8x32xf32>
    %263 = arith.mulf %253, %262 : vector<8x32xf32>
    %264 = tpu.concatenate %241, %263 in 1 : vector<8x32xf32>, vector<8x32xf32> -> vector<8x64xf32>
    %265 = arith.truncf %264 : vector<8x64xf32> to vector<8x64xbf16>
    %cst_66 = arith.constant dense<0.000000e+00> : vector<8x128xf32>
    %266 = tpu.matmul %265, %7, %cst_66 {dimension_numbers = #tpu.dot_dimension_numbers<[1], [0], [0], [1], [0, 0, 1, 1], [], []>} : vector<8x64xbf16>, vector<64x128xbf16>, vector<8x128xf32> -> vector<8x128xf32>
    %267 = vector.broadcast %8 : vector<1x128xf32> to vector<8x128xf32>
    %268 = arith.addf %266, %267 : vector<8x128xf32>
    %269 = arith.negf %268 : vector<8x128xf32>
    %270 = math.exp %269 : vector<8x128xf32>
    %cst_67 = arith.constant 1.000000e+00 : f32
    %271 = vector.broadcast %cst_67 : f32 to vector<8x128xf32>
    %272 = arith.addf %271, %270 : vector<8x128xf32>
    %273 = arith.divf %271, %272 : vector<8x128xf32>
    %274 = vector.extract_strided_slice %273 {offsets = [0, 0], sizes = [8, 32], strides = [1, 1]} : vector<8x128xf32> to vector<8x32xf32>
    %275 = vector.extract_strided_slice %273 {offsets = [0, 32], sizes = [8, 32], strides = [1, 1]} : vector<8x128xf32> to vector<8x32xf32>
    %276 = vector.extract_strided_slice %273 {offsets = [0, 64], sizes = [8, 32], strides = [1, 1]} : vector<8x128xf32> to vector<8x32xf32>
    %277 = vector.extract_strided_slice %273 {offsets = [0, 96], sizes = [8, 32], strides = [1, 1]} : vector<8x128xf32> to vector<8x32xf32>
    %cst_68 = arith.constant 2.000000e+00 : f32
    %278 = vector.broadcast %cst_68 : f32 to vector<8x32xf32>
    %279 = arith.mulf %278, %277 : vector<8x32xf32>
    %cst_69 = arith.constant 1.000000e+00 : f32
    %280 = vector.broadcast %cst_69 : f32 to vector<8x32xf32>
    %281 = arith.subf %279, %280 : vector<8x32xf32>
    %282 = arith.mulf %275, %239 : vector<8x32xf32>
    %283 = arith.mulf %274, %281 : vector<8x32xf32>
    %284 = arith.addf %282, %283 : vector<8x32xf32>
    %285 = math.tanh %284 : vector<8x32xf32>
    %286 = arith.mulf %276, %285 : vector<8x32xf32>
    %287 = vector.extract_strided_slice %5 {offsets = [48, 0], sizes = [8, 128], strides = [1, 1]} : vector<64x128xf32> to vector<8x128xf32>
    %288 = arith.truncf %263 : vector<8x32xf32> to vector<8x32xbf16>
    %cst_70 = arith.constant dense<0.000000e+00> : vector<8x128xf32>
    %289 = tpu.matmul %288, %6, %cst_70 {dimension_numbers = #tpu.dot_dimension_numbers<[1], [0], [0], [1], [0, 0, 1, 1], [], []>} : vector<8x32xbf16>, vector<32x128xbf16>, vector<8x128xf32> -> vector<8x128xf32>
    %290 = arith.addf %287, %289 : vector<8x128xf32>
    %291 = arith.negf %290 : vector<8x128xf32>
    %292 = math.exp %291 : vector<8x128xf32>
    %cst_71 = arith.constant 1.000000e+00 : f32
    %293 = vector.broadcast %cst_71 : f32 to vector<8x128xf32>
    %294 = arith.addf %293, %292 : vector<8x128xf32>
    %295 = arith.divf %293, %294 : vector<8x128xf32>
    %296 = vector.extract_strided_slice %295 {offsets = [0, 0], sizes = [8, 32], strides = [1, 1]} : vector<8x128xf32> to vector<8x32xf32>
    %297 = vector.extract_strided_slice %295 {offsets = [0, 32], sizes = [8, 32], strides = [1, 1]} : vector<8x128xf32> to vector<8x32xf32>
    %298 = vector.extract_strided_slice %295 {offsets = [0, 64], sizes = [8, 32], strides = [1, 1]} : vector<8x128xf32> to vector<8x32xf32>
    %299 = vector.extract_strided_slice %295 {offsets = [0, 96], sizes = [8, 32], strides = [1, 1]} : vector<8x128xf32> to vector<8x32xf32>
    %cst_72 = arith.constant 2.000000e+00 : f32
    %300 = vector.broadcast %cst_72 : f32 to vector<8x32xf32>
    %301 = arith.mulf %300, %299 : vector<8x32xf32>
    %cst_73 = arith.constant 1.000000e+00 : f32
    %302 = vector.broadcast %cst_73 : f32 to vector<8x32xf32>
    %303 = arith.subf %301, %302 : vector<8x32xf32>
    %304 = arith.mulf %297, %261 : vector<8x32xf32>
    %305 = arith.mulf %296, %303 : vector<8x32xf32>
    %306 = arith.addf %304, %305 : vector<8x32xf32>
    %307 = math.tanh %306 : vector<8x32xf32>
    %308 = arith.mulf %298, %307 : vector<8x32xf32>
    %309 = tpu.concatenate %286, %308 in 1 : vector<8x32xf32>, vector<8x32xf32> -> vector<8x64xf32>
    %310 = arith.truncf %309 : vector<8x64xf32> to vector<8x64xbf16>
    %cst_74 = arith.constant dense<0.000000e+00> : vector<8x128xf32>
    %311 = tpu.matmul %310, %7, %cst_74 {dimension_numbers = #tpu.dot_dimension_numbers<[1], [0], [0], [1], [0, 0, 1, 1], [], []>} : vector<8x64xbf16>, vector<64x128xbf16>, vector<8x128xf32> -> vector<8x128xf32>
    %312 = vector.broadcast %8 : vector<1x128xf32> to vector<8x128xf32>
    %313 = arith.addf %311, %312 : vector<8x128xf32>
    %314 = arith.negf %313 : vector<8x128xf32>
    %315 = math.exp %314 : vector<8x128xf32>
    %cst_75 = arith.constant 1.000000e+00 : f32
    %316 = vector.broadcast %cst_75 : f32 to vector<8x128xf32>
    %317 = arith.addf %316, %315 : vector<8x128xf32>
    %318 = arith.divf %316, %317 : vector<8x128xf32>
    %319 = vector.extract_strided_slice %318 {offsets = [0, 0], sizes = [8, 32], strides = [1, 1]} : vector<8x128xf32> to vector<8x32xf32>
    %320 = vector.extract_strided_slice %318 {offsets = [0, 32], sizes = [8, 32], strides = [1, 1]} : vector<8x128xf32> to vector<8x32xf32>
    %321 = vector.extract_strided_slice %318 {offsets = [0, 64], sizes = [8, 32], strides = [1, 1]} : vector<8x128xf32> to vector<8x32xf32>
    %322 = vector.extract_strided_slice %318 {offsets = [0, 96], sizes = [8, 32], strides = [1, 1]} : vector<8x128xf32> to vector<8x32xf32>
    %cst_76 = arith.constant 2.000000e+00 : f32
    %323 = vector.broadcast %cst_76 : f32 to vector<8x32xf32>
    %324 = arith.mulf %323, %322 : vector<8x32xf32>
    %cst_77 = arith.constant 1.000000e+00 : f32
    %325 = vector.broadcast %cst_77 : f32 to vector<8x32xf32>
    %326 = arith.subf %324, %325 : vector<8x32xf32>
    %327 = arith.mulf %320, %284 : vector<8x32xf32>
    %328 = arith.mulf %319, %326 : vector<8x32xf32>
    %329 = arith.addf %327, %328 : vector<8x32xf32>
    %330 = math.tanh %329 : vector<8x32xf32>
    %331 = arith.mulf %321, %330 : vector<8x32xf32>
    %332 = vector.extract_strided_slice %5 {offsets = [56, 0], sizes = [8, 128], strides = [1, 1]} : vector<64x128xf32> to vector<8x128xf32>
    %333 = arith.truncf %308 : vector<8x32xf32> to vector<8x32xbf16>
    %cst_78 = arith.constant dense<0.000000e+00> : vector<8x128xf32>
    %334 = tpu.matmul %333, %6, %cst_78 {dimension_numbers = #tpu.dot_dimension_numbers<[1], [0], [0], [1], [0, 0, 1, 1], [], []>} : vector<8x32xbf16>, vector<32x128xbf16>, vector<8x128xf32> -> vector<8x128xf32>
    %335 = arith.addf %332, %334 : vector<8x128xf32>
    %336 = arith.negf %335 : vector<8x128xf32>
    %337 = math.exp %336 : vector<8x128xf32>
    %cst_79 = arith.constant 1.000000e+00 : f32
    %338 = vector.broadcast %cst_79 : f32 to vector<8x128xf32>
    %339 = arith.addf %338, %337 : vector<8x128xf32>
    %340 = arith.divf %338, %339 : vector<8x128xf32>
    %341 = vector.extract_strided_slice %340 {offsets = [0, 0], sizes = [8, 32], strides = [1, 1]} : vector<8x128xf32> to vector<8x32xf32>
    %342 = vector.extract_strided_slice %340 {offsets = [0, 32], sizes = [8, 32], strides = [1, 1]} : vector<8x128xf32> to vector<8x32xf32>
    %343 = vector.extract_strided_slice %340 {offsets = [0, 64], sizes = [8, 32], strides = [1, 1]} : vector<8x128xf32> to vector<8x32xf32>
    %344 = vector.extract_strided_slice %340 {offsets = [0, 96], sizes = [8, 32], strides = [1, 1]} : vector<8x128xf32> to vector<8x32xf32>
    %cst_80 = arith.constant 2.000000e+00 : f32
    %345 = vector.broadcast %cst_80 : f32 to vector<8x32xf32>
    %346 = arith.mulf %345, %344 : vector<8x32xf32>
    %cst_81 = arith.constant 1.000000e+00 : f32
    %347 = vector.broadcast %cst_81 : f32 to vector<8x32xf32>
    %348 = arith.subf %346, %347 : vector<8x32xf32>
    %349 = arith.mulf %342, %306 : vector<8x32xf32>
    %350 = arith.mulf %341, %348 : vector<8x32xf32>
    %351 = arith.addf %349, %350 : vector<8x32xf32>
    %352 = math.tanh %351 : vector<8x32xf32>
    %353 = arith.mulf %343, %352 : vector<8x32xf32>
    %354 = tpu.concatenate %331, %353 in 1 : vector<8x32xf32>, vector<8x32xf32> -> vector<8x64xf32>
    %355 = arith.truncf %354 : vector<8x64xf32> to vector<8x64xbf16>
    %cst_82 = arith.constant dense<0.000000e+00> : vector<8x128xf32>
    %356 = tpu.matmul %355, %7, %cst_82 {dimension_numbers = #tpu.dot_dimension_numbers<[1], [0], [0], [1], [0, 0, 1, 1], [], []>} : vector<8x64xbf16>, vector<64x128xbf16>, vector<8x128xf32> -> vector<8x128xf32>
    %357 = vector.broadcast %8 : vector<1x128xf32> to vector<8x128xf32>
    %358 = arith.addf %356, %357 : vector<8x128xf32>
    %359 = arith.negf %358 : vector<8x128xf32>
    %360 = math.exp %359 : vector<8x128xf32>
    %cst_83 = arith.constant 1.000000e+00 : f32
    %361 = vector.broadcast %cst_83 : f32 to vector<8x128xf32>
    %362 = arith.addf %361, %360 : vector<8x128xf32>
    %363 = arith.divf %361, %362 : vector<8x128xf32>
    %364 = vector.extract_strided_slice %363 {offsets = [0, 0], sizes = [8, 32], strides = [1, 1]} : vector<8x128xf32> to vector<8x32xf32>
    %365 = vector.extract_strided_slice %363 {offsets = [0, 32], sizes = [8, 32], strides = [1, 1]} : vector<8x128xf32> to vector<8x32xf32>
    %366 = vector.extract_strided_slice %363 {offsets = [0, 64], sizes = [8, 32], strides = [1, 1]} : vector<8x128xf32> to vector<8x32xf32>
    %367 = vector.extract_strided_slice %363 {offsets = [0, 96], sizes = [8, 32], strides = [1, 1]} : vector<8x128xf32> to vector<8x32xf32>
    %cst_84 = arith.constant 2.000000e+00 : f32
    %368 = vector.broadcast %cst_84 : f32 to vector<8x32xf32>
    %369 = arith.mulf %368, %367 : vector<8x32xf32>
    %cst_85 = arith.constant 1.000000e+00 : f32
    %370 = vector.broadcast %cst_85 : f32 to vector<8x32xf32>
    %371 = arith.subf %369, %370 : vector<8x32xf32>
    %372 = arith.mulf %365, %329 : vector<8x32xf32>
    %373 = arith.mulf %364, %371 : vector<8x32xf32>
    %374 = arith.addf %372, %373 : vector<8x32xf32>
    %375 = math.tanh %374 : vector<8x32xf32>
    %376 = arith.mulf %366, %375 : vector<8x32xf32>
    %377 = math.tanh %376 : vector<8x32xf32>
    %c0_86 = arith.constant 0 : index
    %c0_87 = arith.constant 0 : index
    %378 = vector.load %arg8[%c0_86, %c0_87] : memref<32x128xf32, #tpu.memory_space<vmem>>, vector<32x128xf32>
    %cst_88 = arith.constant dense<0.000000e+00> : vector<8x128xf32>
    %379 = tpu.matmul %377, %378, %cst_88 {dimension_numbers = #tpu.dot_dimension_numbers<[1], [0], [0], [1], [0, 0, 1, 1], [], []>} : vector<8x32xf32>, vector<32x128xf32>, vector<8x128xf32> -> vector<8x128xf32>
    %c0_89 = arith.constant 0 : index
    %c0_90 = arith.constant 0 : index
    %380 = vector.load %arg9[%c0_89, %c0_90] : memref<1x128xf32, #tpu.memory_space<vmem>>, vector<1x128xf32>
    %381 = vector.broadcast %380 : vector<1x128xf32> to vector<8x128xf32>
    %382 = arith.addf %379, %381 : vector<8x128xf32>
    %c0_91 = arith.constant 0 : index
    %c0_92 = arith.constant 0 : index
    %383 = vector.load %arg10[%c0_91, %c0_92] : memref<8x128xf32, #tpu.memory_space<vmem>>, vector<8x128xf32>
    tpu.vector_store %arg10[%c0_91, %c0_92], %382 {strides = array<i32>} : memref<8x128xf32, #tpu.memory_space<vmem>>, vector<8x128xf32>,
    return
  }
}

</mosaic_0001>

<bundles_post_ra>
// kernel: tpu_custom_call.1
= control target key start
LH: loop header
LB: loop body
LE: loop exit
PB: predicated region body
PF: predicated region fallthrough
CT: control target
= control target key end

     0   :  { %15 = vsyncpa [#allocation3], 0  ;;  %s2634_s0 = inlined_call_operand.vmem [shape: f32[64,8], index: 0, kind: input, shape index: {}]   ;;  %s2635_s1 = inlined_call_operand.hbm [shape: f32[8,128], index: 1, kind: input, shape index: {}]   ;;  %s2636_s2 = inlined_call_operand.hbm [shape: bf16[32,128], index: 2, kind: input, shape index: {}]   ;;  %s2637_s3 = inlined_call_operand.vmem [shape: f32[1,128], index: 3, kind: input, shape index: {}]   ;;  %s2638_s4 = inlined_call_operand.vmem [shape: bf16[64,128], index: 4, kind: input, shape index: {}]   ;;  %s2639_s5 = inlined_call_operand.vmem [shape: f32[1,128], index: 5, kind: input, shape index: {}]   ;;  %s2640_s6 = inlined_call_operand.vmem [shape: f32[2,8,32], index: 6, kind: input, shape index: {}]   ;;  %s2641_s7 = inlined_call_operand.vmem [shape: f32[2,8,32], index: 7, kind: input, shape index: {}]   ;;  %s2642_s8 = inlined_call_operand.vmem [shape: f32[32,128], index: 8, kind: input, shape index: {}]   ;;  %s2643_s9 = inlined_call_operand.vmem [shape: f32[1,128], index: 9, kind: input, shape index: {}]   ;;  %s2644_s10 = inlined_call_operand.hbm [shape: f32[8,128], index: 10, kind: output, shape index: {}]  }
   0x1   :  { %16 = vsyncpa [#allocation6], 0 }
   0x2   :  { %17 = vsyncpa [#allocation4], 0  ;;  %s2110_s13 = smov [#allocation2]   ;;  %s2111_s15 = smov [#allocation5]  }
   0x3   :  { %s26_s14 = sshll.u32 %s2110_s13, 4  ;;  %s35_s16 = sshll.u32 %s2111_s15, 4  ;;  %s27_s14 = int_to_ptr.vmem [resolvable:$true] %s26_s14  ;;  %s2175_s16 = int_to_ptr.vmem [resolvable:$true] %s35_s16 }
   0x4   :  { %s2038_s19 = scalar_lea.hbm %s2635_s1, 128 }
   0x5   :  { %p2039_p0 = scmp.ne.s32.totalorder %s2635_s1, %s2038_s19  ;;  %p2042_p1 = scmp.lt.u32.totalorder %s2038_s19, %s2635_s1 }
   0x7   :  { %p2044_p2 = pnand %p2042_p1, %p2039_p0 }
   0x9   :  { %2047 = shalt.err (!%p2044_p2)
}
   0xa   :  { %s2048_s24 = scalar_lea.vmem %s27_s14, 128  ;;  %p2053_p4 = scmp.lt.s32.totalorder %s27_s14, %s27_s14 }
   0xb   :  { %p2049_p3 = scmp.ne.s32.totalorder %s27_s14, %s2048_s24  ;;  %p2054_p5 = scmp.lt.s32.totalorder %s2048_s24, %s2048_s24 }
   0xd   :  { %p2055_p6 = por %p2054_p5, %p2053_p4 }
   0xf   :  { %p2056_p7 = pnand %p2055_p6, %p2049_p3 }
  0x11   :  { %2059 = shalt.err (!%p2056_p7)
}
  0x12   :  { %29 = dma.hbm_to_vmem [thread:$0]  %s2635_s1, 128, %s27_s14, [#allocation3]  }
  0x13   :  { %s2060_s29 = scalar_lea.hbm %s2636_s2, 256 }
  0x14   :  { %p2061_p8 = scmp.ne.s32.totalorder %s2636_s2, %s2060_s29  ;;  %p2064_p9 = scmp.lt.u32.totalorder %s2060_s29, %s2636_s2 }
  0x16   :  { %p2066_p10 = pnand %p2064_p9, %p2061_p8 }
  0x18   :  { %2069 = shalt.err (!%p2066_p10)
}
  0x19   :  { %s2070_s15 = scalar_lea.vmem %s2175_s16, 256  ;;  %p2075_p12 = scmp.lt.s32.totalorder %s2175_s16, %s2175_s16 }
  0x1a   :  { %p2071_p11 = scmp.ne.s32.totalorder %s2175_s16, %s2070_s15  ;;  %p2076_p13 = scmp.lt.s32.totalorder %s2070_s15, %s2070_s15 }
  0x1c   :  { %p2077_p0 = por %p2076_p13, %p2075_p12 }
  0x1e   :  { %p2078_p1 = pnand %p2077_p0, %p2071_p11 }
  0x20   :  { %2081 = shalt.err (!%p2078_p1)
}
  0x21   :  { %s2112_s1 = smov 64   ;;  %s2113_s14 = smov 4  }
  0x22   :  { %41 = dma.hbm_to_vmem [thread:$0]  %s2636_s2, 256, %s2175_s16, [#allocation6], %s2112_s1, %s2112_s1, %s2113_s14  }
  0x23   :  { %2104 = dma.done.wait [#allocation3], 128  }
  0x24   :  { %2105 = vsyncadd [#allocation3], 4294967168 }
  0x25   :  { %2106 = dma.done.wait [#allocation6], 256  }
  0x26   :  { %2107 = vsyncadd [#allocation6], 4294967040  ;;  %v2114_v0 = vmov 0.0   ;;  %vm2115_vm0 = vmmov 0   ;;  %v2211_v1 = vld [vmem:[#allocation5] sm:$0xff]   ;;  %vm79_vm1 = vcmask 64512  }
  0x27   :  { %1745 = vmatprep.subr.bf16.mxu1 %v2114_v0  ;;  %1749 = vmatprep.mubr.msk.bf16.mxu1 %vm2115_vm0, %v2114_v0  ;;  %v71_v2 = vld [vmem:[#allocation2] sm:$0xff]  ;;  %v64_v4 = vld [vmem:[%s2634_s0 + $0x8] sm:$0xff]  ;;  %v2220_v5 = vld [vmem:[#allocation5 + $0x8] sm:$0xff]   ;;  %vm241_vm2 = vcmask 261120   ;;  %s2116_s25 = smov 32   ;;  %vm351_vm3 = vcmask 523264  }
  0x28   :  { %v63_v3 = vld [vmem:[%s2634_s0] sm:$0xff]  ;;  %1746 = vmatpush3.bf16.msra.mxu1 %v2211_v1  ;;  %1731 = vmatprep.subr.mxu0 %v71_v2  ;;  %v65_v31 = vld [vmem:[%s2634_s0 + $0x10] sm:$0xff]  ;;  %v66_v32 = vld [vmem:[%s2634_s0 + $0x18] sm:$0xff]  ;;  %s2119_s21 = smov [#allocation7]  }
  0x29   :  { %1732 = vmatpush3.msra.mxu0 %v71_v2  ;;  %1733 = vmatprep.mubr.msk.f32.mxu0 %vm79_vm1, %v63_v3  ;;  %v222_v6 = vld [vmem:[%s2640_s6] sm:$0xff]  ;;  %v2270_v34 = vld [vmem:[%s2638_s4 + $0x8] sm:$0xff]   ;;  %v69_v36 = vld [vmem:[%s2634_s0 + $0x30] sm:$0xff]  ;;  %s1575_s22 = sshll.u32 %s2119_s21, 4  ;;  %s1576_s22 = int_to_ptr.vmem [resolvable:$true] %s1575_s22 }
  0x2a   :  { %1734 = vmatmul.mubr.msk.f32.vlgmr.msra.gmra.mrb[0].mxu0 %vm79_vm1, %v64_v4  ;;  %1747 = vmatprep.subr.bf16.mxu1 %v2114_v0  ;;  %v228_v7 = vpack.c.bf16 %v222_v6, %v222_v6  ;;  %v2237_v8 = vld [vmem:[%s2637_s3] ss:$0 sm:$0xff]  ;;  %v68_v35 = vld [vmem:[%s2634_s0 + $0x28] sm:$0xff]  ;;  %v2287_v37 = vld [vmem:[%s2638_s4 + $0x10] sm:$0xff]   ;;  %p2087_p3 = scmp.lt.s32.totalorder %s1576_s22, %s1576_s22 }
  0x2b   :  { %1753 = vmatprep.subr.bf16.mxu0 %v2114_v0  ;;  %v225_v23 = vld [vmem:[%s2641_s7] sm:$0xff]  ;;  %1736 = vmatprep.mubr.msk.f32.mxu0 %vm79_vm1, %v65_v31  ;;  %v70_v39 = vld [vmem:[%s2634_s0 + $0x38] sm:$0xff]  ;;  %v1594_v50 = vld [vmem:[%s2640_s6 + $0x8] sm:$0xff] }
  0x2c   :  { %1748 = vmatpush3.bf16.msra.mxu1 %v2220_v5  ;;  %v2254_v30 = vld [vmem:[%s2638_s4] sm:$0xff]   ;;  %v2302_v40 = vld [vmem:[%s2638_s4 + $0x18] sm:$0xff]  }
  0x2d   :  { %1773 = vmatprep.subr.bf16.mxu1 %v2114_v0  ;;  %v67_v33 = vld [vmem:[%s2634_s0 + $0x20] sm:$0xff]  ;;  %1754 = vmatpush3.bf16.msra.mxu0 %v2254_v30  ;;  %s2117_s0 = smov 96  }
  0x2e   :  { %1737 = vmatmul.mubr.msk.f32.gmra.mrb[2].mxu0 %vm79_vm1, %v66_v32  ;;  %1755 = vmatprep.subr.bf16.mxu0 %v2114_v0  ;;  %v2349_v55 = vld [vmem:[%s2639_s5] ss:$0 sm:$0xff] }
  0x2f   :  { %1750 = vmatmul.mubr.msk.bf16.vlgmr.msra.gmra.mrb[0].mxu1 %vm241_vm2, %v228_v7  ;;  %1739 = vmatprep.mubr.msk.f32.mxu0 %vm79_vm1, %v67_v33 }
  0x30   :  { %1781 = vmatprep.mubr.msk.bf16.mxu1 %vm2115_vm0, %v2114_v0  ;;  %1774 = vmatpush3.bf16.msra.mxu1 %v2254_v30 }
  0x31   :  { %1775 = vmatprep.subr.bf16.mxu1 %v2114_v0  ;;  %1756 = vmatpush3.bf16.msra.mxu0 %v2270_v34 }
  0x32   :  { %1740 = vmatmul.mubr.msk.f32.gmra.mrb[4].mxu0 %vm79_vm1, %v68_v35  ;;  %1757 = vmatprep.subr.bf16.mxu0 %v2114_v0 }
  0x33   :  { %1742 = vmatprep.mubr.msk.f32.mxu0 %vm79_vm1, %v69_v36 }
  0x34   :  { %1776 = vmatpush3.bf16.msra.mxu1 %v2270_v34 }
  0x35   :  { %1777 = vmatprep.subr.bf16.mxu1 %v2114_v0  ;;  %1758 = vmatpush3.bf16.msra.mxu0 %v2287_v37 }
  0x36   :  { %1743 = vmatmul.mubr.msk.f32.gmra.mrb[6].mxu0 %vm79_vm1, %v70_v39  ;;  %1759 = vmatprep.subr.bf16.mxu0 %v2114_v0 }
  0x37   :  { %1761 = vmatprep.mubr.msk.bf16.mxu0 %vm2115_vm0, %v2114_v0 }
  0x38   :  { %1778 = vmatpush3.bf16.msra.mxu1 %v2287_v37 }
  0x39   :  { %1779 = vmatprep.subr.bf16.mxu1 %v2114_v0  ;;  %1760 = vmatpush3.bf16.msra.mxu0 %v2302_v40 }
  0x3a   :  { %1765 = vmatprep.subr.bf16.mxu0 %v2114_v0 }
  0x3c   :  { %1780 = vmatpush3.bf16.msra.mxu1 %v2302_v40 }
  0x3d   :  { %1805 = vmatprep.subr.bf16.mxu1 %v2114_v0 }
  0xfd   :  { %v2239_v9 = vpop.f32.mrb[0].mxu0 }
  0xfe   :  { %v170_v10 = vpop.f32.mrb[1].mxu0  ;;  %v176_v62 = vadd.f32 %v2239_v9, %v2237_v8  ;;  %v1595_v9 = vld [vmem:[%s2641_s7 + $0x8] sm:$0xff] }
  0xff   :  { %v171_v11 = vadd.f32 %v2237_v8, %v170_v10 }
 0x101   :  { %v2316_v44 = vpop.f32.mrb[2].mxu0 }
 0x102   :  { %v279_v12 = vpop.f32.mrb[0].mxu1  ;;  %v2318_v45 = vpop.f32.mrb[3].mxu0 }
 0x103   :  { %v285_v13 = vadd.f32 %v279_v12, %v171_v11  ;;  %v1751_v14 = vpop.f32.mrb[1].mxu1 }
 0x104   :  { %v282_v15 = vpop.f32.mrb[2].mxu1 }
 0x105   :  { %v1599_v16 = vmul.f32 -1.442695, %v285_v13  ;;  %v1752_v17 = vpop.f32.mrb[3].mxu1  ;;  %v2320_v46 = vpop.f32.mrb[4].mxu0 }
 0x106   :  { %v2322_v47 = vpop.f32.mrb[5].mxu0 }
 0x107   :  { %1938 = vpow2.f32 %v1599_v16 }
 0x109   :  { %v2324_v48 = vpop.f32.mrb[6].mxu0 }
 0x10a   :  { %v2326_v49 = vpop.f32.mrb[7].mxu0 }
 0x111   :  { %v1939_v18 = vpop.eup %1938 }
 0x112   :  { %v289_v19 = vadd.f32 1.0, %v1939_v18 }
 0x114   :  { %1940 = vrcp.f32 %v289_v19 }
 0x11e   :  { %v1941_v20 = vpop.eup %1940 }
 0x11f   :  { %v292_v21 = vmul.f32 2.0, %v1941_v20 }
 0x121   :  { %v1600_v22 = vadd.f32 -1.0, %v292_v21 }
 0x123   :  { %300 = vrot.lane.b32.xlu0 %v1600_v22, %s2116_s25 }
 0x127   :  { %295 = vrot.lane.b32.xlu0 %v225_v23, %s2116_s25 }
 0x195   :  { %v301_v24 = vpop.permute.xlu0 %300 }
 0x196   :  { %v303_v25 = vmul.f32 %v1941_v20, %v301_v24 }
 0x198   :  { %305 = vrot.lane.b32.xlu1 %v303_v25, %s2116_s25 }
 0x199   :  { %v296_v26 = vpop.permute.xlu0 %295 }
 0x19a   :  { %v298_v27 = vmul.f32 %v1941_v20, %v296_v26 }
 0x20a   :  { %v306_v28 = vpop.permute.xlu1 %305 }
 0x20b   :  { %v2248_v29 = vadd.f32 %v306_v28, %v298_v27 }
 0x20d   :  { %1942 = vtanh.f32 %v2248_v29 }
 0x217   :  { %v1943_v38 = vpop.eup %1942 }
 0x218   :  { %311 = vrot.lane.b32.xlu1 %v1943_v38, %s2116_s25 }
 0x28a   :  { %v312_v41 = vpop.permute.xlu1 %311 }
 0x28b   :  { %v314_v42 = vmul.f32 %v1941_v20, %v312_v41 }
 0x28d   :  { %316 = vrot.lane.b32.xlu0 %v314_v42, %s2117_s0  ;;  %v424_v43 = vpack.c.bf16 %v314_v42, %v314_v42 }
 0x28f   :  { %426 = vrot.lane.b32.xlu1 %v424_v43, %s2112_s1 }
 0x2ff   :  { %v317_v51 = vpop.permute.xlu0 %316 }
 0x300   :  { %v319_v52 = vsel %vm241_vm2, %v1594_v50, %v317_v51 }
 0x301   :  { %v320_v53 = vpack.c.bf16 %v319_v52, %v319_v52  ;;  %v427_v54 = vpop.permute.xlu1 %426 }
 0x303   :  { %1762 = vmatmul.mubr.msk.bf16.vlgmr.msra.gmra.mrb[8].mxu0 %vm351_vm3, %v320_v53  ;;  %v181_v53 = vadd.f32 %v2237_v8, %v2318_v45 }
 0x304   :  { %1766 = vmatpush3.bf16.msra.mxu0 %v2211_v1  ;;  %1769 = vmatprep.mubr.msk.bf16.mxu0 %vm2115_vm0, %v2114_v0 }
 0x305   :  { %1767 = vmatprep.subr.bf16.mxu0 %v2114_v0 }
 0x308   :  { %1768 = vmatpush3.bf16.msra.mxu0 %v2220_v5 }
 0x309   :  { %1785 = vmatprep.subr.bf16.mxu0 %v2114_v0 }
 0x30b   :  { %1770 = vmatmul.mubr.msk.bf16.vlgmr.msra.gmra.mrb[12].mxu0 %vm241_vm2, %v427_v54 }
 0x30c   :  { %1786 = vmatpush3.bf16.msra.mxu0 %v2211_v1  ;;  %1789 = vmatprep.mubr.msk.bf16.mxu0 %vm2115_vm0, %v2114_v0 }
 0x30d   :  { %1787 = vmatprep.subr.bf16.mxu0 %v2114_v0 }
 0x310   :  { %1788 = vmatpush3.bf16.msra.mxu0 %v2220_v5 }
 0x311   :  { %1793 = vmatprep.subr.bf16.mxu0 %v2114_v0 }
 0x3d6   :  { %v389_v56 = vpop.f32.mrb[8].mxu0 }
 0x3d7   :  { %v390_v57 = vadd.f32 %v2349_v55, %v389_v56  ;;  %v1763_v58 = vpop.f32.mrb[9].mxu0 }
 0x3d8   :  { %v392_v59 = vpop.f32.mrb[10].mxu0 }
 0x3d9   :  { %v1607_v60 = vmul.f32 -1.442695, %v390_v57  ;;  %v1764_v61 = vpop.f32.mrb[11].mxu0 }
 0x3db   :  { %1944 = vpow2.f32 %v1607_v60 }
 0x3de   :  { %v465_v63 = vpop.f32.mrb[12].mxu0 }
 0x3df   :  { %v471_v2 = vadd.f32 %v465_v63, %v176_v62  ;;  %v1771_v3 = vpop.f32.mrb[13].mxu0 }
 0x3e0   :  { %v468_v4 = vpop.f32.mrb[14].mxu0 }
 0x3e1   :  { %v1610_v6 = vmul.f32 -1.442695, %v471_v2  ;;  %v1772_v7 = vpop.f32.mrb[15].mxu0 }
 0x3e3   :  { %1946 = vpow2.f32 %v1610_v6 }
 0x3e5   :  { %v1945_v10 = vpop.eup %1944 }
 0x3e6   :  { %v398_v11 = vadd.f32 1.0, %v1945_v10 }
 0x3e8   :  { %1948 = vrcp.f32 %v398_v11 }
 0x3ed   :  { %v1947_v12 = vpop.eup %1946 }
 0x3ee   :  { %v475_v13 = vadd.f32 1.0, %v1947_v12 }
 0x3f0   :  { %1950 = vrcp.f32 %v475_v13 }
 0x3f2   :  { %v1949_v14 = vpop.eup %1948 }
 0x3f3   :  { %v401_v15 = vmul.f32 2.0, %v1949_v14 }
 0x3f5   :  { %v1608_v16 = vadd.f32 -1.0, %v401_v15 }
 0x3f7   :  { %409 = vrot.lane.b32.xlu0 %v1608_v16, %s2116_s25 }
 0x3fa   :  { %v1951_v17 = vpop.eup %1950 }
 0x3fb   :  { %404 = vrot.lane.b32.xlu0 %v1595_v9, %s2116_s25  ;;  %v478_v18 = vmul.f32 2.0, %v1951_v17  ;;  %v480_v28 = vmul.f32 %v1951_v17, %v2248_v29 }
 0x3fd   :  { %v1611_v19 = vadd.f32 -1.0, %v478_v18 }
 0x3ff   :  { %482 = vrot.lane.b32.xlu1 %v1611_v19, %s2116_s25 }
 0x469   :  { %v410_v20 = vpop.permute.xlu0 %409 }
 0x46a   :  { %v412_v21 = vmul.f32 %v1949_v14, %v410_v20 }
 0x46c   :  { %414 = vrot.lane.b32.xlu1 %v412_v21, %s2116_s25 }
 0x46d   :  { %v405_v24 = vpop.permute.xlu0 %404 }
 0x46e   :  { %v407_v25 = vmul.f32 %v1949_v14, %v405_v24 }
 0x471   :  { %v483_v22 = vpop.permute.xlu1 %482 }
 0x472   :  { %v485_v23 = vmul.f32 %v1951_v17, %v483_v22 }
 0x474   :  { %487 = vrot.lane.b32.xlu0 %v485_v23, %s2116_s25 }
 0x4de   :  { %v415_v26 = vpop.permute.xlu1 %414 }
 0x4df   :  { %v2362_v27 = vadd.f32 %v415_v26, %v407_v25 }
 0x4e1   :  { %1952 = vtanh.f32 %v2362_v27 }
 0x4e6   :  { %v488_v31 = vpop.permute.xlu0 %487 }
 0x4e7   :  { %v2366_v32 = vadd.f32 %v488_v31, %v480_v28 }
 0x4e9   :  { %1954 = vtanh.f32 %v2366_v32 }
 0x4eb   :  { %v1953_v33 = vpop.eup %1952 }
 0x4ec   :  { %420 = vrot.lane.b32.xlu1 %v1953_v33, %s2116_s25 }
 0x4f3   :  { %v1955_v35 = vpop.eup %1954 }
 0x4f4   :  { %493 = vrot.lane.b32.xlu0 %v1955_v35, %s2116_s25 }
 0x55e   :  { %v421_v36 = vpop.permute.xlu1 %420 }
 0x55f   :  { %v423_v38 = vmul.f32 %v1949_v14, %v421_v36 }
 0x561   :  { %498 = vrot.lane.b32.xlu1 %v423_v38, %s2112_s1 }
 0x566   :  { %v494_v39 = vpop.permute.xlu0 %493 }
 0x567   :  { %v496_v41 = vmul.f32 %v1951_v17, %v494_v39 }
 0x569   :  { %502 = vrot.lane.b32.xlu0 %v496_v41, %s2117_s0  ;;  %v575_v29 = vpack.c.bf16 %v496_v41, %v496_v41 }
 0x56b   :  { %577 = vrot.lane.b32.xlu1 %v575_v29, %s2112_s1 }
 0x5d3   :  { %v499_v42 = vpop.permute.xlu1 %498 }
 0x5db   :  { %v503_v43 = vpop.permute.xlu0 %502 }
 0x5dc   :  { %v505_v50 = vsel %vm241_vm2, %v499_v42, %v503_v43  ;;  %v186_v42 = vadd.f32 %v2316_v44, %v2237_v8 }
 0x5dd   :  { %v506_v51 = vpack.c.bf16 %v505_v50, %v505_v50  ;;  %v578_v52 = vpop.permute.xlu1 %577 }
 0x5de   :  { %1790 = vmatmul.mubr.msk.bf16.vlgmr.msra.gmra.mrb[16].mxu0 %vm241_vm2, %v578_v52 }
 0x5df   :  { %1782 = vmatmul.mubr.msk.bf16.vlgmr.msra.gmra.mrb[4].mxu1 %vm351_vm3, %v506_v51  ;;  %1794 = vmatpush3.bf16.msra.mxu0 %v2254_v30 }
 0x5e0   :  { %1795 = vmatprep.subr.bf16.mxu0 %v2114_v0  ;;  %1806 = vmatpush3.bf16.msra.mxu1 %v2211_v1 }
 0x5e1   :  { %1807 = vmatprep.subr.bf16.mxu1 %v2114_v0  ;;  %1801 = vmatprep.mubr.msk.bf16.mxu0 %vm2115_vm0, %v2114_v0 }
 0x5e2   :  { %1809 = vmatprep.mubr.msk.bf16.mxu1 %vm2115_vm0, %v2114_v0 }
 0x5e3   :  { %1796 = vmatpush3.bf16.msra.mxu0 %v2270_v34 }
 0x5e4   :  { %1797 = vmatprep.subr.bf16.mxu0 %v2114_v0  ;;  %1808 = vmatpush3.bf16.msra.mxu1 %v2220_v5 }
 0x5e5   :  { %1813 = vmatprep.subr.bf16.mxu1 %v2114_v0 }
 0x5e7   :  { %1798 = vmatpush3.bf16.msra.mxu0 %v2287_v37 }
 0x5e8   :  { %1799 = vmatprep.subr.bf16.mxu0 %v2114_v0 }
 0x5eb   :  { %1800 = vmatpush3.bf16.msra.mxu0 %v2302_v40 }
 0x5ec   :  { %1825 = vmatprep.subr.bf16.mxu0 %v2114_v0 }
 0x6b1   :  { %v616_v54 = vpop.f32.mrb[16].mxu0 }
 0x6b2   :  { %v622_v56 = vadd.f32 %v616_v54, %v181_v53  ;;  %v544_v57 = vpop.f32.mrb[4].mxu1  ;;  %v1791_v58 = vpop.f32.mrb[17].mxu0 }
 0x6b3   :  { %v545_v59 = vadd.f32 %v2349_v55, %v544_v57  ;;  %v1783_v60 = vpop.f32.mrb[5].mxu1  ;;  %v619_v61 = vpop.f32.mrb[18].mxu0 }
 0x6b4   :  { %v1616_v62 = vmul.f32 -1.442695, %v622_v56  ;;  %v547_v63 = vpop.f32.mrb[6].mxu1  ;;  %v1792_v2 = vpop.f32.mrb[19].mxu0 }
 0x6b5   :  { %v1613_v3 = vmul.f32 -1.442695, %v545_v59  ;;  %v1784_v4 = vpop.f32.mrb[7].mxu1 }
 0x6b6   :  { %1956 = vpow2.f32 %v1616_v62 }
 0x6b7   :  { %1958 = vpow2.f32 %v1613_v3 }
 0x6c0   :  { %v1957_v6 = vpop.eup %1956 }
 0x6c1   :  { %v1959_v7 = vpop.eup %1958  ;;  %v626_v10 = vadd.f32 1.0, %v1957_v6 }
 0x6c2   :  { %v553_v11 = vadd.f32 1.0, %v1959_v7 }
 0x6c3   :  { %1960 = vrcp.f32 %v626_v10 }
 0x6c4   :  { %1962 = vrcp.f32 %v553_v11 }
 0x6cd   :  { %v1961_v45 = vpop.eup %1960 }
 0x6ce   :  { %v1963_v12 = vpop.eup %1962  ;;  %v629_v13 = vmul.f32 2.0, %v1961_v45  ;;  %v631_v20 = vmul.f32 %v1961_v45, %v2366_v32 }
 0x6cf   :  { %v556_v14 = vmul.f32 2.0, %v1963_v12  ;;  %v558_v22 = vmul.f32 %v1963_v12, %v2362_v27 }
 0x6d0   :  { %v1617_v15 = vadd.f32 -1.0, %v629_v13 }
 0x6d1   :  { %v1614_v16 = vadd.f32 -1.0, %v556_v14 }
 0x6d2   :  { %633 = vrot.lane.b32.xlu1 %v1617_v15, %s2116_s25 }
 0x6d3   :  { %560 = vrot.lane.b32.xlu0 %v1614_v16, %s2116_s25 }
 0x744   :  { %v634_v9 = vpop.permute.xlu1 %633 }
 0x745   :  { %v636_v17 = vmul.f32 %v1961_v45, %v634_v9  ;;  %v561_v18 = vpop.permute.xlu0 %560 }
 0x746   :  { %v563_v19 = vmul.f32 %v1963_v12, %v561_v18 }
 0x747   :  { %638 = vrot.lane.b32.xlu1 %v636_v17, %s2116_s25 }
 0x748   :  { %565 = vrot.lane.b32.xlu0 %v563_v19, %s2116_s25 }
 0x7b9   :  { %v639_v21 = vpop.permute.xlu1 %638 }
 0x7ba   :  { %v2402_v23 = vadd.f32 %v639_v21, %v631_v20  ;;  %v566_v24 = vpop.permute.xlu0 %565 }
 0x7bb   :  { %v2404_v25 = vadd.f32 %v566_v24, %v558_v22 }
 0x7bc   :  { %1964 = vtanh.f32 %v2402_v23 }
 0x7bd   :  { %1966 = vtanh.f32 %v2404_v25 }
 0x7c6   :  { %v1965_v26 = vpop.eup %1964 }
 0x7c7   :  { %v1967_v28 = vpop.eup %1966  ;;  %644 = vrot.lane.b32.xlu1 %v1965_v26, %s2116_s25 }
 0x7c8   :  { %571 = vrot.lane.b32.xlu0 %v1967_v28, %s2116_s25 }
 0x839   :  { %v645_v31 = vpop.permute.xlu1 %644 }
 0x83a   :  { %v647_v32 = vmul.f32 %v1961_v45, %v645_v31  ;;  %v572_v33 = vpop.permute.xlu0 %571 }
 0x83b   :  { %v574_v35 = vmul.f32 %v1963_v12, %v572_v33 }
 0x83c   :  { %653 = vrot.lane.b32.xlu1 %v647_v32, %s2117_s0  ;;  %v726_v27 = vpack.c.bf16 %v647_v32, %v647_v32 }
 0x83d   :  { %649 = vrot.lane.b32.xlu0 %v574_v35, %s2112_s1 }
 0x841   :  { %728 = vrot.lane.b32.xlu0 %v726_v27, %s2112_s1  ;;  %v191_v27 = vadd.f32 %v2237_v8, %v2322_v47 }
 0x8ae   :  { %v654_v36 = vpop.permute.xlu1 %653 }
 0x8af   :  { %v650_v38 = vpop.permute.xlu0 %649 }
 0x8b0   :  { %v656_v39 = vsel %vm241_vm2, %v650_v38, %v654_v36 }
 0x8b1   :  { %v657_v41 = vpack.c.bf16 %v656_v39, %v656_v39 }
 0x8b3   :  { %1802 = vmatmul.mubr.msk.bf16.vlgmr.msra.gmra.mrb[20].mxu0 %vm351_vm3, %v657_v41  ;;  %v729_v29 = vpop.permute.xlu0 %728 }
 0x8b4   :  { %1810 = vmatmul.mubr.msk.bf16.vlgmr.msra.gmra.mrb[8].mxu1 %vm241_vm2, %v729_v29  ;;  %1826 = vmatpush3.bf16.msra.mxu0 %v2211_v1 }
 0x8b5   :  { %1814 = vmatpush3.bf16.msra.mxu1 %v2254_v30  ;;  %1827 = vmatprep.subr.bf16.mxu0 %v2114_v0 }
 0x8b6   :  { %1815 = vmatprep.subr.bf16.mxu1 %v2114_v0  ;;  %1821 = vmatprep.mubr.msk.bf16.mxu1 %vm2115_vm0, %v2114_v0 }
 0x8b7   :  { %1829 = vmatprep.mubr.msk.bf16.mxu0 %vm2115_vm0, %v2114_v0 }
 0x8b8   :  { %1828 = vmatpush3.bf16.msra.mxu0 %v2220_v5 }
 0x8b9   :  { %1816 = vmatpush3.bf16.msra.mxu1 %v2270_v34  ;;  %1833 = vmatprep.subr.bf16.mxu0 %v2114_v0 }
 0x8ba   :  { %1817 = vmatprep.subr.bf16.mxu1 %v2114_v0 }
 0x8bd   :  { %1818 = vmatpush3.bf16.msra.mxu1 %v2287_v37 }
 0x8be   :  { %1819 = vmatprep.subr.bf16.mxu1 %v2114_v0 }
 0x8c1   :  { %1820 = vmatpush3.bf16.msra.mxu1 %v2302_v40 }
 0x8c2   :  { %1845 = vmatprep.subr.bf16.mxu1 %v2114_v0 }
 0x986   :  { %v695_v43 = vpop.f32.mrb[20].mxu0 }
 0x987   :  { %v696_v50 = vadd.f32 %v2349_v55, %v695_v43  ;;  %v1803_v51 = vpop.f32.mrb[21].mxu0  ;;  %v767_v52 = vpop.f32.mrb[8].mxu1 }
 0x988   :  { %v773_v53 = vadd.f32 %v767_v52, %v186_v42  ;;  %v698_v54 = vpop.f32.mrb[22].mxu0  ;;  %v1811_v56 = vpop.f32.mrb[9].mxu1 }
 0x989   :  { %v1619_v57 = vmul.f32 -1.442695, %v696_v50  ;;  %v1804_v58 = vpop.f32.mrb[23].mxu0  ;;  %v770_v59 = vpop.f32.mrb[10].mxu1 }
 0x98a   :  { %v1622_v60 = vmul.f32 -1.442695, %v773_v53  ;;  %v1812_v61 = vpop.f32.mrb[11].mxu1 }
 0x98b   :  { %1968 = vpow2.f32 %v1619_v57 }
 0x98c   :  { %1970 = vpow2.f32 %v1622_v60 }
 0x995   :  { %v1969_v62 = vpop.eup %1968 }
 0x996   :  { %v1971_v63 = vpop.eup %1970  ;;  %v704_v2 = vadd.f32 1.0, %v1969_v62 }
 0x997   :  { %v777_v3 = vadd.f32 1.0, %v1971_v63 }
 0x998   :  { %1972 = vrcp.f32 %v704_v2 }
 0x999   :  { %1974 = vrcp.f32 %v777_v3 }
 0x9a2   :  { %v1973_v44 = vpop.eup %1972 }
 0x9a3   :  { %v1975_v4 = vpop.eup %1974  ;;  %v707_v6 = vmul.f32 2.0, %v1973_v44  ;;  %v709_v15 = vmul.f32 %v1973_v44, %v2404_v25 }
 0x9a4   :  { %v780_v7 = vmul.f32 2.0, %v1975_v4  ;;  %v782_v9 = vmul.f32 %v1975_v4, %v2402_v23 }
 0x9a5   :  { %v1620_v10 = vadd.f32 -1.0, %v707_v6 }
 0x9a6   :  { %v1623_v11 = vadd.f32 -1.0, %v780_v7 }
 0x9a7   :  { %711 = vrot.lane.b32.xlu1 %v1620_v10, %s2116_s25 }
 0x9a8   :  { %784 = vrot.lane.b32.xlu0 %v1623_v11, %s2116_s25 }
 0xa19   :  { %v712_v45 = vpop.permute.xlu1 %711 }
 0xa1a   :  { %v714_v12 = vmul.f32 %v1973_v44, %v712_v45  ;;  %v785_v13 = vpop.permute.xlu0 %784 }
 0xa1b   :  { %v787_v14 = vmul.f32 %v1975_v4, %v785_v13 }
 0xa1c   :  { %716 = vrot.lane.b32.xlu1 %v714_v12, %s2116_s25 }
 0xa1d   :  { %789 = vrot.lane.b32.xlu0 %v787_v14, %s2116_s25 }
 0xa8e   :  { %v717_v16 = vpop.permute.xlu1 %716 }
 0xa8f   :  { %v2441_v17 = vadd.f32 %v717_v16, %v709_v15  ;;  %v790_v18 = vpop.permute.xlu0 %789 }
 0xa90   :  { %v2443_v19 = vadd.f32 %v790_v18, %v782_v9 }
 0xa91   :  { %1976 = vtanh.f32 %v2441_v17 }
 0xa92   :  { %1978 = vtanh.f32 %v2443_v19 }
 0xa9b   :  { %v1977_v20 = vpop.eup %1976 }
 0xa9c   :  { %v1979_v21 = vpop.eup %1978  ;;  %722 = vrot.lane.b32.xlu1 %v1977_v20, %s2116_s25 }
 0xa9d   :  { %795 = vrot.lane.b32.xlu0 %v1979_v21, %s2116_s25 }
 0xb0e   :  { %v723_v22 = vpop.permute.xlu1 %722 }
 0xb0f   :  { %v725_v24 = vmul.f32 %v1973_v44, %v723_v22  ;;  %v796_v25 = vpop.permute.xlu0 %795 }
 0xb10   :  { %v798_v26 = vmul.f32 %v1975_v4, %v796_v25 }
 0xb11   :  { %800 = vrot.lane.b32.xlu1 %v725_v24, %s2112_s1 }
 0xb12   :  { %804 = vrot.lane.b32.xlu0 %v798_v26, %s2117_s0  ;;  %v877_v23 = vpack.c.bf16 %v798_v26, %v798_v26  ;;  %v196_v26 = vadd.f32 %v2320_v46, %v2237_v8 }
 0xb15   :  { %879 = vrot.lane.b32.xlu1 %v877_v23, %s2112_s1 }
 0xb83   :  { %v801_v28 = vpop.permute.xlu1 %800 }
 0xb84   :  { %v805_v31 = vpop.permute.xlu0 %804 }
 0xb85   :  { %v807_v32 = vsel %vm241_vm2, %v801_v28, %v805_v31 }
 0xb86   :  { %v808_v33 = vpack.c.bf16 %v807_v32, %v807_v32 }
 0xb87   :  { %v880_v35 = vpop.permute.xlu1 %879 }
 0xb88   :  { %1822 = vmatmul.mubr.msk.bf16.vlgmr.msra.gmra.mrb[12].mxu1 %vm351_vm3, %v808_v33  ;;  %1830 = vmatmul.mubr.msk.bf16.vlgmr.msra.gmra.mrb[24].mxu0 %vm241_vm2, %v880_v35 }
 0xb89   :  { %1834 = vmatpush3.bf16.msra.mxu0 %v2254_v30  ;;  %1846 = vmatpush3.bf16.msra.mxu1 %v2211_v1 }
 0xb8a   :  { %1835 = vmatprep.subr.bf16.mxu0 %v2114_v0  ;;  %1847 = vmatprep.subr.bf16.mxu1 %v2114_v0 }
 0xb8b   :  { %1841 = vmatprep.mubr.msk.bf16.mxu0 %vm2115_vm0, %v2114_v0  ;;  %1849 = vmatprep.mubr.msk.bf16.mxu1 %vm2115_vm0, %v2114_v0 }
 0xb8d   :  { %1836 = vmatpush3.bf16.msra.mxu0 %v2270_v34  ;;  %1848 = vmatpush3.bf16.msra.mxu1 %v2220_v5 }
 0xb8e   :  { %1837 = vmatprep.subr.bf16.mxu0 %v2114_v0  ;;  %1853 = vmatprep.subr.bf16.mxu1 %v2114_v0 }
 0xb91   :  { %1838 = vmatpush3.bf16.msra.mxu0 %v2287_v37 }
 0xb92   :  { %1839 = vmatprep.subr.bf16.mxu0 %v2114_v0 }
 0xb95   :  { %1840 = vmatpush3.bf16.msra.mxu0 %v2302_v40 }
 0xb96   :  { %1865 = vmatprep.subr.bf16.mxu0 %v2114_v0 }
 0xc5b   :  { %v846_v36 = vpop.f32.mrb[12].mxu1  ;;  %v918_v38 = vpop.f32.mrb[24].mxu0 }
 0xc5c   :  { %v847_v39 = vadd.f32 %v2349_v55, %v846_v36  ;;  %v924_v41 = vadd.f32 %v918_v38, %v191_v27  ;;  %v1823_v29 = vpop.f32.mrb[13].mxu1  ;;  %v1831_v42 = vpop.f32.mrb[25].mxu0 }
 0xc5d   :  { %v849_v43 = vpop.f32.mrb[14].mxu1  ;;  %v921_v50 = vpop.f32.mrb[26].mxu0 }
 0xc5e   :  { %v1625_v51 = vmul.f32 -1.442695, %v847_v39  ;;  %v1628_v52 = vmul.f32 -1.442695, %v924_v41  ;;  %v1824_v53 = vpop.f32.mrb[15].mxu1  ;;  %v1832_v54 = vpop.f32.mrb[27].mxu0 }
 0xc60   :  { %1980 = vpow2.f32 %v1625_v51 }
 0xc61   :  { %1982 = vpow2.f32 %v1628_v52 }
 0xc6a   :  { %v1981_v56 = vpop.eup %1980 }
 0xc6b   :  { %v1983_v57 = vpop.eup %1982  ;;  %v855_v58 = vadd.f32 1.0, %v1981_v56 }
 0xc6c   :  { %v928_v59 = vadd.f32 1.0, %v1983_v57 }
 0xc6d   :  { %1984 = vrcp.f32 %v855_v58 }
 0xc6e   :  { %1986 = vrcp.f32 %v928_v59 }
 0xc77   :  { %v1985_v47 = vpop.eup %1984 }
 0xc78   :  { %v1987_v60 = vpop.eup %1986  ;;  %v858_v61 = vmul.f32 2.0, %v1985_v47  ;;  %v860_v7 = vmul.f32 %v1985_v47, %v2441_v17 }
 0xc79   :  { %v931_v62 = vmul.f32 2.0, %v1987_v60  ;;  %v933_v11 = vmul.f32 %v1987_v60, %v2443_v19 }
 0xc7a   :  { %v1626_v63 = vadd.f32 -1.0, %v858_v61 }
 0xc7b   :  { %v1629_v2 = vadd.f32 -1.0, %v931_v62 }
 0xc7c   :  { %862 = vrot.lane.b32.xlu0 %v1626_v63, %s2116_s25 }
 0xc7d   :  { %935 = vrot.lane.b32.xlu1 %v1629_v2, %s2116_s25 }
 0xcee   :  { %v863_v3 = vpop.permute.xlu0 %862 }
 0xcef   :  { %v865_v44 = vmul.f32 %v1985_v47, %v863_v3  ;;  %v936_v4 = vpop.permute.xlu1 %935 }
 0xcf0   :  { %v938_v6 = vmul.f32 %v1987_v60, %v936_v4 }
 0xcf1   :  { %867 = vrot.lane.b32.xlu0 %v865_v44, %s2116_s25 }
 0xcf2   :  { %940 = vrot.lane.b32.xlu1 %v938_v6, %s2116_s25 }
 0xd63   :  { %v868_v10 = vpop.permute.xlu0 %867 }
 0xd64   :  { %v2480_v45 = vadd.f32 %v868_v10, %v860_v7  ;;  %v941_v12 = vpop.permute.xlu1 %940 }
 0xd65   :  { %v2482_v13 = vadd.f32 %v941_v12, %v933_v11 }
 0xd66   :  { %1988 = vtanh.f32 %v2480_v45 }
 0xd67   :  { %1990 = vtanh.f32 %v2482_v13 }
 0xd70   :  { %v1989_v14 = vpop.eup %1988 }
 0xd71   :  { %v1991_v15 = vpop.eup %1990  ;;  %873 = vrot.lane.b32.xlu0 %v1989_v14, %s2116_s25 }
 0xd72   :  { %946 = vrot.lane.b32.xlu1 %v1991_v15, %s2116_s25 }
 0xde3   :  { %v874_v16 = vpop.permute.xlu0 %873 }
 0xde4   :  { %v876_v9 = vmul.f32 %v1985_v47, %v874_v16  ;;  %v947_v17 = vpop.permute.xlu1 %946 }
 0xde5   :  { %v949_v18 = vmul.f32 %v1987_v60, %v947_v17 }
 0xde6   :  { %951 = vrot.lane.b32.xlu0 %v876_v9, %s2112_s1 }
 0xde7   :  { %955 = vrot.lane.b32.xlu1 %v949_v18, %s2117_s0  ;;  %v1028_v19 = vpack.c.bf16 %v949_v18, %v949_v18 }
 0xdea   :  { %1030 = vrot.lane.b32.xlu0 %v1028_v19, %s2112_s1 }
 0xe58   :  { %v952_v20 = vpop.permute.xlu0 %951 }
 0xe59   :  { %v956_v21 = vpop.permute.xlu1 %955 }
 0xe5a   :  { %v958_v22 = vsel %vm241_vm2, %v952_v20, %v956_v21 }
 0xe5b   :  { %v959_v24 = vpack.c.bf16 %v958_v22, %v958_v22 }
 0xe5c   :  { %v1031_v25 = vpop.permute.xlu0 %1030 }
 0xe5d   :  { %1842 = vmatmul.mubr.msk.bf16.vlgmr.msra.gmra.mrb[28].mxu0 %vm351_vm3, %v959_v24  ;;  %1850 = vmatmul.mubr.msk.bf16.vlgmr.msra.gmra.mrb[16].mxu1 %vm241_vm2, %v1031_v25 }
 0xe5e   :  { %1854 = vmatpush3.bf16.msra.mxu1 %v2254_v30  ;;  %1866 = vmatpush3.bf16.msra.mxu0 %v2211_v1 }
 0xe5f   :  { %1855 = vmatprep.subr.bf16.mxu1 %v2114_v0  ;;  %1867 = vmatprep.subr.bf16.mxu0 %v2114_v0 }
 0xe60   :  { %1861 = vmatprep.mubr.msk.bf16.mxu1 %vm2115_vm0, %v2114_v0  ;;  %1869 = vmatprep.mubr.msk.bf16.mxu0 %vm2115_vm0, %v2114_v0 }
 0xe62   :  { %1856 = vmatpush3.bf16.msra.mxu1 %v2270_v34  ;;  %1868 = vmatpush3.bf16.msra.mxu0 %v2220_v5 }
 0xe63   :  { %1857 = vmatprep.subr.bf16.mxu1 %v2114_v0  ;;  %1873 = vmatprep.subr.bf16.mxu0 %v2114_v0 }
 0xe66   :  { %1858 = vmatpush3.bf16.msra.mxu1 %v2287_v37 }
 0xe67   :  { %1859 = vmatprep.subr.bf16.mxu1 %v2114_v0 }
 0xe6a   :  { %1860 = vmatpush3.bf16.msra.mxu1 %v2302_v40 }
 0xe6b   :  { %1885 = vmatprep.subr.bf16.mxu1 %v2114_v0 }
 0xf30   :  { %v997_v23 = vpop.f32.mrb[28].mxu0  ;;  %v1069_v28 = vpop.f32.mrb[16].mxu1 }
 0xf31   :  { %v998_v31 = vadd.f32 %v2349_v55, %v997_v23  ;;  %v1843_v32 = vpop.f32.mrb[29].mxu0  ;;  %v1075_v33 = vadd.f32 %v1069_v28, %v196_v26  ;;  %v1851_v35 = vpop.f32.mrb[17].mxu1 }
 0xf32   :  { %v1000_v27 = vpop.f32.mrb[30].mxu0  ;;  %v1072_v36 = vpop.f32.mrb[18].mxu1 }
 0xf33   :  { %v1631_v38 = vmul.f32 -1.442695, %v998_v31  ;;  %v1634_v39 = vmul.f32 -1.442695, %v1075_v33  ;;  %v1844_v41 = vpop.f32.mrb[31].mxu0  ;;  %v1852_v29 = vpop.f32.mrb[19].mxu1 }
 0xf35   :  { %1992 = vpow2.f32 %v1631_v38 }
 0xf36   :  { %1994 = vpow2.f32 %v1634_v39 }
 0xf3f   :  { %v1993_v42 = vpop.eup %1992 }
 0xf40   :  { %v1995_v43 = vpop.eup %1994  ;;  %v1006_v50 = vadd.f32 1.0, %v1993_v42 }
 0xf41   :  { %v1079_v51 = vadd.f32 1.0, %v1995_v43 }
 0xf42   :  { %1996 = vrcp.f32 %v1006_v50 }
 0xf43   :  { %1998 = vrcp.f32 %v1079_v51 }
 0xf4c   :  { %v1997_v46 = vpop.eup %1996 }
 0xf4d   :  { %v1999_v52 = vpop.eup %1998  ;;  %v1009_v53 = vmul.f32 2.0, %v1997_v46  ;;  %v1011_v61 = vmul.f32 %v1997_v46, %v2480_v45 }
 0xf4e   :  { %v1082_v54 = vmul.f32 2.0, %v1999_v52  ;;  %v1084_v63 = vmul.f32 %v1999_v52, %v2482_v13 }
 0xf4f   :  { %v1632_v56 = vadd.f32 -1.0, %v1009_v53 }
 0xf50   :  { %v1635_v57 = vadd.f32 -1.0, %v1082_v54 }
 0xf51   :  { %1013 = vrot.lane.b32.xlu1 %v1632_v56, %s2116_s25 }
 0xf52   :  { %1086 = vrot.lane.b32.xlu0 %v1635_v57, %s2116_s25 }
 0xfc3   :  { %v1014_v58 = vpop.permute.xlu1 %1013 }
 0xfc4   :  { %v1016_v59 = vmul.f32 %v1997_v46, %v1014_v58  ;;  %v1087_v47 = vpop.permute.xlu0 %1086 }
 0xfc5   :  { %v1089_v60 = vmul.f32 %v1999_v52, %v1087_v47 }
 0xfc6   :  { %1018 = vrot.lane.b32.xlu1 %v1016_v59, %s2116_s25 }
 0xfc7   :  { %1091 = vrot.lane.b32.xlu0 %v1089_v60, %s2116_s25 }
0x1038   :  { %v1019_v62 = vpop.permute.xlu1 %1018 }
0x1039   :  { %v2519_v2 = vadd.f32 %v1019_v62, %v1011_v61  ;;  %v1092_v3 = vpop.permute.xlu0 %1091 }
0x103a   :  { %v2521_v44 = vadd.f32 %v1092_v3, %v1084_v63 }
0x103b   :  { %2000 = vtanh.f32 %v2519_v2 }
0x103c   :  { %2002 = vtanh.f32 %v2521_v44 }
0x1045   :  { %v2001_v4 = vpop.eup %2000 }
0x1046   :  { %v2003_v6 = vpop.eup %2002  ;;  %1024 = vrot.lane.b32.xlu1 %v2001_v4, %s2116_s25  ;;  %v2036_v4 = vld [vmem:[%s2637_s3] ss:$0 sm:$0xff] }
0x1047   :  { %1097 = vrot.lane.b32.xlu0 %v2003_v6, %s2116_s25 }
0x10b8   :  { %v1025_v7 = vpop.permute.xlu1 %1024 }
0x10b9   :  { %v1027_v10 = vmul.f32 %v1997_v46, %v1025_v7  ;;  %v1098_v11 = vpop.permute.xlu0 %1097 }
0x10ba   :  { %v1100_v45 = vmul.f32 %v1999_v52, %v1098_v11 }
0x10bb   :  { %1102 = vrot.lane.b32.xlu1 %v1027_v10, %s2112_s1 }
0x10bc   :  { %1106 = vrot.lane.b32.xlu0 %v1100_v45, %s2117_s0  ;;  %v1179_v12 = vpack.c.bf16 %v1100_v45, %v1100_v45 }
0x10bf   :  { %1181 = vrot.lane.b32.xlu1 %v1179_v12, %s2112_s1 }
0x112d   :  { %v1103_v13 = vpop.permute.xlu1 %1102 }
0x112e   :  { %v1107_v14 = vpop.permute.xlu0 %1106 }
0x112f   :  { %v1109_v15 = vsel %vm241_vm2, %v1103_v13, %v1107_v14 }
0x1130   :  { %v1110_v16 = vpack.c.bf16 %v1109_v15, %v1109_v15 }
0x1131   :  { %v1182_v9 = vpop.permute.xlu1 %1181 }
0x1132   :  { %1862 = vmatmul.mubr.msk.bf16.vlgmr.msra.gmra.mrb[20].mxu1 %vm351_vm3, %v1110_v16  ;;  %1870 = vmatmul.mubr.msk.bf16.vlgmr.msra.gmra.mrb[32].mxu0 %vm241_vm2, %v1182_v9 }
0x1133   :  { %1874 = vmatpush3.bf16.msra.mxu0 %v2254_v30  ;;  %1886 = vmatpush3.bf16.msra.mxu1 %v2211_v1  ;;  %v201_v1 = vadd.f32 %v2237_v8, %v2326_v49 }
0x1134   :  { %1875 = vmatprep.subr.bf16.mxu0 %v2114_v0  ;;  %1887 = vmatprep.subr.bf16.mxu1 %v2114_v0 }
0x1135   :  { %1881 = vmatprep.mubr.msk.bf16.mxu0 %vm2115_vm0, %v2114_v0  ;;  %1889 = vmatprep.mubr.msk.bf16.mxu1 %vm2115_vm0, %v2114_v0 }
0x1137   :  { %1876 = vmatpush3.bf16.msra.mxu0 %v2270_v34  ;;  %1888 = vmatpush3.bf16.msra.mxu1 %v2220_v5 }
0x1138   :  { %1877 = vmatprep.subr.bf16.mxu0 %v2114_v0  ;;  %1893 = vmatprep.subr.bf16.mxu1 %v2114_v0 }
0x113b   :  { %1878 = vmatpush3.bf16.msra.mxu0 %v2287_v37 }
0x113c   :  { %1879 = vmatprep.subr.bf16.mxu0 %v2114_v0 }
0x113f   :  { %1880 = vmatpush3.bf16.msra.mxu0 %v2302_v40 }
0x1205   :  { %v1148_v17 = vpop.f32.mrb[20].mxu1  ;;  %v1220_v18 = vpop.f32.mrb[32].mxu0 }
0x1206   :  { %v1149_v19 = vadd.f32 %v2349_v55, %v1148_v17  ;;  %v1226_v20 = vadd.f32 %v1220_v18, %v201_v1  ;;  %v1863_v21 = vpop.f32.mrb[21].mxu1  ;;  %v1871_v5 = vpop.f32.mrb[33].mxu0 }
0x1207   :  { %v1151_v22 = vpop.f32.mrb[22].mxu1  ;;  %v1223_v24 = vpop.f32.mrb[34].mxu0 }
0x1208   :  { %v1637_v25 = vmul.f32 -1.442695, %v1149_v19  ;;  %v1640_v26 = vmul.f32 -1.442695, %v1226_v20  ;;  %v1864_v23 = vpop.f32.mrb[23].mxu1  ;;  %v1872_v28 = vpop.f32.mrb[35].mxu0 }
0x120a   :  { %2004 = vpow2.f32 %v1637_v25 }
0x120b   :  { %2006 = vpow2.f32 %v1640_v26 }
0x1214   :  { %v2005_v31 = vpop.eup %2004 }
0x1215   :  { %v2007_v32 = vpop.eup %2006  ;;  %v1157_v33 = vadd.f32 1.0, %v2005_v31 }
0x1216   :  { %v1230_v35 = vadd.f32 1.0, %v2007_v32 }
0x1217   :  { %2008 = vrcp.f32 %v1157_v33 }
0x1218   :  { %2010 = vrcp.f32 %v1230_v35 }
0x1221   :  { %v2009_v8 = vpop.eup %2008 }
0x1222   :  { %v2011_v49 = vpop.eup %2010  ;;  %v1160_v27 = vmul.f32 2.0, %v2009_v8  ;;  %v1162_v50 = vmul.f32 %v2009_v8, %v2519_v2 }
0x1223   :  { %v1233_v36 = vmul.f32 2.0, %v2011_v49  ;;  %v1235_v46 = vmul.f32 %v2011_v49, %v2521_v44 }
0x1224   :  { %v1638_v38 = vadd.f32 -1.0, %v1160_v27 }
0x1225   :  { %v1641_v39 = vadd.f32 -1.0, %v1233_v36 }
0x1226   :  { %1164 = vrot.lane.b32.xlu0 %v1638_v38, %s2116_s25 }
0x1227   :  { %1237 = vrot.lane.b32.xlu1 %v1641_v39, %s2116_s25 }
0x1298   :  { %v1165_v41 = vpop.permute.xlu0 %1164 }
0x1299   :  { %v1167_v29 = vmul.f32 %v2009_v8, %v1165_v41  ;;  %v1238_v42 = vpop.permute.xlu1 %1237 }
0x129a   :  { %v1240_v43 = vmul.f32 %v2011_v49, %v1238_v42 }
0x129b   :  { %1169 = vrot.lane.b32.xlu0 %v1167_v29, %s2116_s25 }
0x129c   :  { %1242 = vrot.lane.b32.xlu1 %v1240_v43, %s2116_s25 }
0x130d   :  { %v1170_v51 = vpop.permute.xlu0 %1169 }
0x130e   :  { %v2557_v52 = vadd.f32 %v1170_v51, %v1162_v50  ;;  %v1243_v53 = vpop.permute.xlu1 %1242  ;;  %v2037_v50 = vld [vmem:[%s2639_s5] ss:$0 sm:$0xff] }
0x130f   :  { %v2559_v54 = vadd.f32 %v1243_v53, %v1235_v46 }
0x1310   :  { %2012 = vtanh.f32 %v2557_v52 }
0x1311   :  { %2014 = vtanh.f32 %v2559_v54 }
0x131a   :  { %v2013_v56 = vpop.eup %2012 }
0x131b   :  { %v2015_v57 = vpop.eup %2014  ;;  %1175 = vrot.lane.b32.xlu0 %v2013_v56, %s2116_s25 }
0x131c   :  { %1248 = vrot.lane.b32.xlu1 %v2015_v57, %s2116_s25 }
0x138d   :  { %v1176_v58 = vpop.permute.xlu0 %1175 }
0x138e   :  { %v1178_v59 = vmul.f32 %v2009_v8, %v1176_v58  ;;  %v1249_v47 = vpop.permute.xlu1 %1248 }
0x138f   :  { %v1251_v60 = vmul.f32 %v2011_v49, %v1249_v47 }
0x1390   :  { %1253 = vrot.lane.b32.xlu0 %v1178_v59, %s2112_s1 }
0x1391   :  { %1257 = vrot.lane.b32.xlu1 %v1251_v60, %s2117_s0  ;;  %v1330_v61 = vpack.c.bf16 %v1251_v60, %v1251_v60 }
0x1394   :  { %1332 = vrot.lane.b32.xlu0 %v1330_v61, %s2112_s1 }
0x1402   :  { %v1254_v62 = vpop.permute.xlu0 %1253 }
0x1403   :  { %v1258_v63 = vpop.permute.xlu1 %1257 }
0x1404   :  { %v1260_v2 = vsel %vm241_vm2, %v1254_v62, %v1258_v63 }
0x1405   :  { %v1261_v3 = vpack.c.bf16 %v1260_v2, %v1260_v2 }
0x1406   :  { %v1333_v44 = vpop.permute.xlu0 %1332 }
0x1407   :  { %1882 = vmatmul.mubr.msk.bf16.vlgmr.msra.gmra.mrb[36].mxu0 %vm351_vm3, %v1261_v3  ;;  %1890 = vmatmul.mubr.msk.bf16.vlgmr.msra.gmra.mrb[24].mxu1 %vm241_vm2, %v1333_v44  ;;  %v1482_v3 = vld [vmem:[%s2642_s8] sm:$0xff]  ;;  %v1483_v44 = vld [vmem:[%s2642_s8 + $0x8] sm:$0xff] }
0x1408   :  { %1894 = vmatpush3.bf16.msra.mxu1 %v2254_v30  ;;  %1901 = vmatprep.mubr.msk.bf16.mxu1 %vm2115_vm0, %v2114_v0  ;;  %v206_v30 = vadd.f32 %v2036_v4, %v2324_v48  ;;  %v1484_v4 = vld [vmem:[%s2642_s8 + $0x10] sm:$0xff] }
0x1409   :  { %1895 = vmatprep.subr.bf16.mxu1 %v2114_v0 }
0x140c   :  { %1896 = vmatpush3.bf16.msra.mxu1 %v2270_v34 }
0x140d   :  { %1897 = vmatprep.subr.bf16.mxu1 %v2114_v0 }
0x1410   :  { %1898 = vmatpush3.bf16.msra.mxu1 %v2287_v37 }
0x1411   :  { %1899 = vmatprep.subr.bf16.mxu1 %v2114_v0 }
0x1414   :  { %1900 = vmatpush3.bf16.msra.mxu1 %v2302_v40 }
0x14da   :  { %v1299_v6 = vpop.f32.mrb[36].mxu0  ;;  %v1371_v7 = vpop.f32.mrb[24].mxu1 }
0x14db   :  { %v1300_v10 = vadd.f32 %v2349_v55, %v1299_v6  ;;  %v1883_v11 = vpop.f32.mrb[37].mxu0  ;;  %v1377_v34 = vadd.f32 %v1371_v7, %v206_v30  ;;  %v1891_v45 = vpop.f32.mrb[25].mxu1  ;;  %v2118_v30 = vmov 0.0|0.0   ;;  %v1917_v6 = vpack.c.bf16 %v1483_v44, %v1482_v3  ;;  %v1485_v7 = vld [vmem:[%s2642_s8 + $0x18] sm:$0xff]  ;;  %s2082_s8 = scalar_lea.vmem %s1576_s22, 128 }
0x14dc   :  { %v1302_v12 = vpop.f32.mrb[38].mxu0  ;;  %v1374_v13 = vpop.f32.mrb[26].mxu1  ;;  %1916 = vmatprep.subr.bf16.mxu1 %v2118_v30  ;;  %p2083_p2 = scmp.ne.s32.totalorder %s1576_s22, %s2082_s8  ;;  %p2088_p4 = scmp.lt.s32.totalorder %s2082_s8, %s2082_s8 }
0x14dd   :  { %v1643_v37 = vmul.f32 -1.442695, %v1300_v10  ;;  %v1646_v14 = vmul.f32 -1.442695, %v1377_v34  ;;  %v1884_v15 = vpop.f32.mrb[39].mxu0  ;;  %v1892_v16 = vpop.f32.mrb[27].mxu1  ;;  %v1920_v10 = vpack.c.bf16 %v1485_v7, %v1484_v4 }
0x14de   :  { %v1651_v13 = vld [vmem:[%s2643_s9] ss:$0 sm:$0xff]  ;;  %p2089_p5 = por %p2088_p4, %p2087_p3 }
0x14df   :  { %2016 = vpow2.f32 %v1643_v37 }
0x14e0   :  { %2018 = vpow2.f32 %v1646_v14  ;;  %p2090_p6 = pnand %p2089_p5, %p2083_p2 }
0x14e9   :  { %v2017_v40 = vpop.eup %2016 }
0x14ea   :  { %v2019_v9 = vpop.eup %2018  ;;  %v1308_v1 = vadd.f32 1.0, %v2017_v40 }
0x14eb   :  { %v1381_v17 = vadd.f32 1.0, %v2019_v9 }
0x14ec   :  { %2020 = vrcp.f32 %v1308_v1 }
0x14ed   :  { %2022 = vrcp.f32 %v1381_v17 }
0x14f6   :  { %v2021_v48 = vpop.eup %2020 }
0x14f7   :  { %v2023_v18 = vpop.eup %2022  ;;  %v1311_v55 = vmul.f32 2.0, %v2021_v48  ;;  %v1313_v26 = vmul.f32 %v2021_v48, %v2557_v52 }
0x14f8   :  { %v1384_v19 = vmul.f32 2.0, %v2023_v18  ;;  %v1386_v28 = vmul.f32 %v2023_v18, %v2559_v54 }
0x14f9   :  { %v1644_v20 = vadd.f32 -1.0, %v1311_v55 }
0x14fa   :  { %v1647_v21 = vadd.f32 -1.0, %v1384_v19 }
0x14fb   :  { %1315 = vrot.lane.b32.xlu1 %v1644_v20, %s2116_s25 }
0x14fc   :  { %1388 = vrot.lane.b32.xlu0 %v1647_v21, %s2116_s25 }
0x156d   :  { %v1316_v5 = vpop.permute.xlu1 %1315 }
0x156e   :  { %v1318_v22 = vmul.f32 %v2021_v48, %v1316_v5  ;;  %v1389_v24 = vpop.permute.xlu0 %1388 }
0x156f   :  { %v1391_v25 = vmul.f32 %v2023_v18, %v1389_v24 }
0x1570   :  { %1320 = vrot.lane.b32.xlu1 %v1318_v22, %s2116_s25 }
0x1571   :  { %1393 = vrot.lane.b32.xlu0 %v1391_v25, %s2116_s25 }
0x15e2   :  { %v1321_v23 = vpop.permute.xlu1 %1320 }
0x15e3   :  { %v1323_v31 = vadd.f32 %v1321_v23, %v1313_v26  ;;  %v1394_v32 = vpop.permute.xlu0 %1393 }
0x15e4   :  { %v1396_v33 = vadd.f32 %v1394_v32, %v1386_v28 }
0x15e5   :  { %2024 = vtanh.f32 %v1323_v31 }
0x15e6   :  { %2026 = vtanh.f32 %v1396_v33 }
0x15ef   :  { %v2025_v35 = vpop.eup %2024 }
0x15f0   :  { %v2027_v8 = vpop.eup %2026  ;;  %1326 = vrot.lane.b32.xlu1 %v2025_v35, %s2116_s25 }
0x15f1   :  { %1399 = vrot.lane.b32.xlu0 %v2027_v8, %s2116_s25 }
0x1662   :  { %v1327_v49 = vpop.permute.xlu1 %1326 }
0x1663   :  { %v1329_v27 = vmul.f32 %v2021_v48, %v1327_v49  ;;  %v1400_v36 = vpop.permute.xlu0 %1399 }
0x1664   :  { %v1402_v38 = vmul.f32 %v2023_v18, %v1400_v36 }
0x1665   :  { %1404 = vrot.lane.b32.xlu1 %v1329_v27, %s2112_s1 }
0x1666   :  { %1408 = vrot.lane.b32.xlu0 %v1402_v38, %s2117_s0 }
0x16d7   :  { %v1405_v39 = vpop.permute.xlu1 %1404 }
0x16d8   :  { %v1409_v41 = vpop.permute.xlu0 %1408 }
0x16d9   :  { %v1411_v29 = vsel %vm241_vm2, %v1405_v39, %v1409_v41 }
0x16da   :  { %v1412_v42 = vpack.c.bf16 %v1411_v29, %v1411_v29 }
0x16dc   :  { %1902 = vmatmul.mubr.msk.bf16.vlgmr.msra.gmra.mrb[28].mxu1 %vm351_vm3, %v1412_v42 }
0x16dd   :  { %1913 = vmatprep.mubr.msk.f32.mxu1 %vm2115_vm0, %v2114_v0  ;;  %1918 = vmatpush3.bf16.msra.mxu1 %v1917_v6 }
0x16de   :  { %1919 = vmatprep.subr.bf16.mxu1 %v2118_v30 }
0x16e1   :  { %1921 = vmatpush3.bf16.msra.mxu1 %v1920_v10 }
0x17af   :  { %v1450_v43 = vpop.f32.mrb[28].mxu1 }
0x17b0   :  { %v1451_v51 = vadd.f32 %v2037_v50, %v1450_v43  ;;  %v1903_v46 = vpop.f32.mrb[29].mxu1 }
0x17b1   :  { %v1453_v52 = vpop.f32.mrb[30].mxu1 }
0x17b2   :  { %v1649_v53 = vmul.f32 -1.442695, %v1451_v51  ;;  %v1904_v54 = vpop.f32.mrb[31].mxu1 }
0x17b4   :  { %2028 = vpow2.f32 %v1649_v53 }
0x17be   :  { %v2029_v56 = vpop.eup %2028 }
0x17bf   :  { %v1459_v57 = vadd.f32 1.0, %v2029_v56 }
0x17c1   :  { %2030 = vrcp.f32 %v1459_v57 }
0x17cb   :  { %v2031_v58 = vpop.eup %2030 }
0x17cc   :  { %v1462_v59 = vmul.f32 2.0, %v2031_v58  ;;  %v1464_v61 = vmul.f32 %v2031_v58, %v1323_v31 }
0x17ce   :  { %v1650_v47 = vadd.f32 -1.0, %v1462_v59 }
0x17d0   :  { %1466 = vrot.lane.b32.xlu1 %v1650_v47, %s2116_s25 }
0x1842   :  { %v1467_v0 = vpop.permute.xlu1 %1466 }
0x1843   :  { %v1469_v60 = vmul.f32 %v2031_v58, %v1467_v0 }
0x1845   :  { %1471 = vrot.lane.b32.xlu0 %v1469_v60, %s2116_s25 }
0x18b7   :  { %v1472_v62 = vpop.permute.xlu0 %1471 }
0x18b8   :  { %v1474_v63 = vadd.f32 %v1472_v62, %v1464_v61 }
0x18ba   :  { %2032 = vtanh.f32 %v1474_v63 }
0x18c4   :  { %v2033_v2 = vpop.eup %2032 }
0x18c5   :  { %1477 = vrot.lane.b32.xlu1 %v2033_v2, %s2116_s25 }
0x1937   :  { %v1478_v11 = vpop.permute.xlu1 %1477 }
0x1938   :  { %v1480_v34 = vmul.f32 %v2031_v58, %v1478_v11 }
0x193a   :  { %2034 = vtanh.f32 %v1480_v34 }
0x1944   :  { %v2035_v45 = vpop.eup %2034 }
0x1945   :  { %1494 = vrot.lane.b32.xlu0 %v2035_v45, %s2112_s1 }
0x19b7   :  { %v1495_v12 = vpop.permute.xlu0 %1494 }
0x19b8   :  { %1914 = vmatmul.mubr.msk.f32.vlgmr.msra.gmra.mrb[32].mxu1 %vm241_vm2, %v1495_v12 }
0x1a8b   :  { %v1564_v37 = vpop.f32.mrb[32].mxu1 }
0x1a8c   :  { %v1565_v14 = vadd.f32 %v1651_v13, %v1564_v37  ;;  %v1915_v15 = vpop.f32.mrb[33].mxu1 }
0x1a8e   :  { %1568 = vst [vmem:[#allocation7] sm:$0xff] %v1565_v14 }
0x1a8f   :  { %2093 = shalt.err (!%p2090_p6)
}
0x1a90   :  { %s2094_s24 = scalar_lea.hbm %s2644_s10, 128 }
0x1a91   :  { %p2095_p7 = scmp.ne.s32.totalorder %s2644_s10, %s2094_s24  ;;  %p2098_p8 = scmp.lt.u32.totalorder %s2094_s24, %s2644_s10 }
0x1a93   :  { %p2100_p9 = pnand %p2098_p8, %p2095_p7 }
0x1a95   :  { %2103 = shalt.err (!%p2100_p9)
}
0x1a96   :  { %1578 = dma.vmem_to_hbm [thread:$0]  %s1576_s22, 128, %s2644_s10, [#allocation4]  }
0x1a97   :  { %2108 = dma.done.wait [#allocation4], 128  }
0x1a98   :  { %2109 = vsyncadd [#allocation4], 4294967168 }
0x1a99   :  { %1582 = vsyncpa [#allocation3], 1 }
0x1a9a   :  { %1583 = vsyncpa [#allocation6], 1 }
0x1a9b   :  { %1584 = vsyncpa [#allocation4], 1 }

</bundles_post_ra>
